<compile_context>
chip_gen: v5e
topology: v5e:2x2
jax: 0.10.0
libtpu: 0.0.40
codegen_flags: <defaults>
</compile_context>

<pallas_src>
import jax
import jax.numpy as jnp
from jax import lax
from jax.experimental import pallas as pl
from jax.experimental.pallas import tpu as pltpu


def _round_up(v, m):
    return ((v + m - 1) // m) * m


def _largest_aligned_divisor(n, align, cap):
    """Largest d <= cap with d % align == 0 and n % d == 0 (requires n % align == 0)."""
    cap = max(align, min(cap, n))
    best = align
    for d in range(align, cap + 1, align):
        if n % d == 0:
            best = d
    return best


def _dot_nt(x_tile, w_tile):
    # (tm, tk) contracted with (tn, tk) on K (minor dim of both) -> (tm, tn).
    # Weight stays in PyTorch (out, in) layout; no XLU transpose per step.
    return lax.dot_general(
        x_tile, w_tile,
        dimension_numbers=(((1,), (1,)), ((), ())),
        preferred_element_type=jnp.float32)


# ---------- kernels: accumulate directly into the resident f32 output block ----------

def _mm_kernel_1k(x_ref, w_ref, o_ref):
    o_ref[...] = _dot_nt(x_ref[...], w_ref[...])


def _mm_bias_kernel_1k(x_ref, w_ref, b_ref, o_ref):
    o_ref[...] = _dot_nt(x_ref[...], w_ref[...]) + b_ref[...]


def _mm_kernel(x_ref, w_ref, o_ref):
    @pl.when(pl.program_id(2) == 0)
    def _():
        o_ref[...] = jnp.zeros_like(o_ref)

    o_ref[...] += _dot_nt(x_ref[...], w_ref[...])


def _mm_bias_kernel(x_ref, w_ref, b_ref, o_ref):
    @pl.when(pl.program_id(2) == 0)
    def _():
        o_ref[...] = jnp.zeros_like(o_ref)

    o_ref[...] += _dot_nt(x_ref[...], w_ref[...])

    @pl.when(pl.program_id(2) == pl.num_programs(2) - 1)
    def _():
        o_ref[...] += b_ref[...]


# ---------- wrapper ----------

_VMEM_TILE_BUDGET = 20 * 1024 * 1024   # double-buffered x/w/out tiles; v7x headroom


def linear_regression_no_gate(x, weight, bias=None, *,
                              tm_cap=512, tn_cap=512, tk_cap=2048):
    """Pallas equivalent of linearRegressionNoGate.forward.

    x:      (B, inputSize)            float32
    weight: (outputSize, inputSize)   float32 (PyTorch layout)
    bias:   optional (outputSize,)    float32
    returns (B, outputSize)           x.dtype
    """
    B, K = x.shape
    N, Kw = weight.shape
    assert K == Kw, "weight inputSize mismatch"
    out_dtype = x.dtype

    # XLA fast path: sub-MXU dims or tiny total work. A pallas_call would be
    # pure dispatch overhead (pad/slice HBM passes + ~600 cycles per grid step).
    if B < 8 or N < 128 or K < 128 or (B * N * K) <= 2 * (128 ** 3):
        out = x @ weight.T
        if bias is not None:
            out = out + bias
        return out.astype(out_dtype)

    # Pad only to the hardware minimum (8, 128); tiles below are divisors of
    # the padded dims, so there is no tile-multiple padding waste.
    Mp, Np, Kp = _round_up(B, 8), _round_up(N, 128), _round_up(K, 128)

    xf = x.astype(jnp.float32)
    wf = weight.astype(jnp.float32)
    xp = xf if (Mp == B and Kp == K) else jnp.pad(xf, ((0, Mp - B), (0, Kp - K)))
    wp = wf if (Np == N and Kp == K) else jnp.pad(wf, ((0, Np - N), (0, Kp - K)))

    # Tile selection: big output tiles, K in as few steps as possible.
    tm = _largest_aligned_divisor(Mp, 8, tm_cap)
    tn = _largest_aligned_divisor(Np, 128, tn_cap)
    tk = _largest_aligned_divisor(Kp, 128, tk_cap)

    def _footprint(tm_, tn_, tk_):
        # double-buffered x, w tiles + double-buffered resident output tile (f32)
        return 4 * (2 * tm_ * tk_ + 2 * tn_ * tk_ + 2 * tm_ * tn_)

    while _footprint(tm, tn, tk) > _VMEM_TILE_BUDGET:
        if tk > 128:
            tk = _largest_aligned_divisor(Kp, 128, tk - 128)
        elif tn > 128:
            tn = _largest_aligned_divisor(Np, 128, tn - 128)
        elif tm > 8:
            tm = _largest_aligned_divisor(Mp, 8, tm - 8)
        else:
            break

    # Keep >= 2 parallel (M x N) grid cells so both v7x TensorCores get work.
    if (Mp // tm) * (Np // tn) < 2:
        if Mp // 8 >= 2:
            tm = _largest_aligned_divisor(Mp, 8, Mp // 2)
        elif Np // 128 >= 2:
            tn = _largest_aligned_divisor(Np, 128, Np // 2)

    grid = (Mp // tm, Np // tn, Kp // tk)     # reduction (K) axis last
    single_k = grid[2] == 1

    x_spec = pl.BlockSpec((tm, tk), lambda i, j, k: (i, k))
    w_spec = pl.BlockSpec((tn, tk), lambda i, j, k: (j, k))
    o_spec = pl.BlockSpec((tm, tn), lambda i, j, k: (i, j))

    compiler_params = pltpu.CompilerParams(
        dimension_semantics=("parallel", "parallel", "arbitrary"),
        vmem_limit_bytes=32 * 1024 * 1024)
    out_shape = jax.ShapeDtypeStruct((Mp, Np), jnp.float32)

    if bias is not None:
        b2d = bias.astype(jnp.float32).reshape(1, N)
        if Np != N:
            b2d = jnp.pad(b2d, ((0, 0), (0, Np - N)))
        b_spec = pl.BlockSpec((1, tn), lambda i, j, k: (0, j))
        kernel = _mm_bias_kernel_1k if single_k else _mm_bias_kernel
        in_specs = [x_spec, w_spec, b_spec]
        args = (xp, wp, b2d)
    else:
        kernel = _mm_kernel_1k if single_k else _mm_kernel
        in_specs = [x_spec, w_spec]
        args = (xp, wp)

    out_p = pl.pallas_call(
        kernel,
        out_shape=out_shape,
        grid_spec=pltpu.PrefetchScalarGridSpec(
            num_scalar_prefetch=0,
            grid=grid,
            in_specs=in_specs,
            out_specs=o_spec),
        compiler_params=compiler_params,
    )(*args)

    if Mp != B or Np != N:
        out_p = out_p[:B, :N]
    return out_p.astype(out_dtype)


if __name__ == "__main__":
    key = jax.random.PRNGKey(0)
    k_x, k_w, k_x2, k_w2, k_x3, k_w3 = jax.random.split(key, 6)

    # --- Main case: already (8,128)-aligned -> no pad, no slice, single-K-step
    #     kernel with two parallel M tiles (exercises the Pallas path).
    batch, input_size, output_size = 256, 640, 384
    weight = jax.random.uniform(
        k_w, (output_size, input_size), dtype=jnp.float32, minval=-1.0, maxval=1.0)
    bias = jnp.zeros((output_size,), dtype=jnp.float32)   # torch init: zeros
    x = jax.random.normal(k_x, (batch, input_size), dtype=jnp.float32)

    ref = lax.dot_general(
        x, weight, (((1,), (1,)), ((), ())),
        precision=lax.Precision.HIGHEST) + bias

    out = jax.block_until_ready(linear_regression_no_gate(x, weight, bias))
    assert out.shape == (batch, output_size)
    assert jnp.allclose(out, ref, atol=1e-2, rtol=1e-2)

    # --- Same problem, forced multi-K accumulation path (tk capped at 256).
    out_mk = jax.block_until_ready(
        linear_regression_no_gate(x, weight, bias, tk_cap=256))
    assert jnp.allclose(out_mk, ref, atol=1e-2, rtol=1e-2)

    # --- No-bias kernel.
    ref_nb = lax.dot_general(
        x, weight, (((1,), (1,)), ((), ())), precision=lax.Precision.HIGHEST)
    out_nb = jax.block_until_ready(linear_regression_no_gate(x, weight, None))
    assert jnp.allclose(out_nb, ref_nb, atol=1e-2, rtol=1e-2)

    # --- Ragged shape: exercises minimal (8,128) padding + final slice.
    b3, k3, n3 = 250, 600, 380
    w3 = jax.random.uniform(
        k_w3, (n3, k3), dtype=jnp.float32, minval=-1.0, maxval=1.0)
    b3v = jnp.zeros((n3,), dtype=jnp.float32)
    x3 = jax.random.normal(k_x3, (b3, k3), dtype=jnp.float32)
    ref3 = lax.dot_general(
        x3, w3, (((1,), (1,)), ((), ())), precision=lax.Precision.HIGHEST) + b3v
    out3 = jax.block_until_ready(linear_regression_no_gate(x3, w3, b3v))
    assert out3.shape == (b3, n3)
    assert jnp.allclose(out3, ref3, atol=1e-2, rtol=1e-2)

    # --- Tiny case (matches original torch demo scale): XLA fast path.
    w_small = jax.random.uniform(
        k_w2, (16, 32), dtype=jnp.float32, minval=-1.0, maxval=1.0)
    b_small = jnp.zeros((16,), dtype=jnp.float32)
    x_small = jax.random.normal(k_x2, (8, 32), dtype=jnp.float32)
    out_small = jax.block_until_ready(
        linear_regression_no_gate(x_small, w_small, b_small))
    ref_small = x_small @ w_small.T + b_small
    assert jnp.allclose(out_small, ref_small, atol=1e-5, rtol=1e-5)

    print("KERNEL_OK")
</pallas_src>

<mosaic_0001>
module attributes {stable_mosaic.version = 11 : i64} {
  func.func @_mm_bias_kernel_1k(%arg0: i32, %arg1: i32, %arg2: i32, %arg3: memref<128x640xf32, #tpu.memory_space<vmem>>, %arg4: memref<384x640xf32, #tpu.memory_space<vmem>>, %arg5: memref<1x384xf32, #tpu.memory_space<vmem>>, %arg6: memref<128x384xf32, #tpu.memory_space<vmem>>) attributes {dimension_semantics = [#tpu.dimension_semantics<parallel>, #tpu.dimension_semantics<parallel>, #tpu.dimension_semantics<arbitrary>], iteration_bounds = array<i64: 2, 1, 1>, scalar_prefetch = 0 : i64, scratch_operands = 0 : i64, tpu.core_type = #tpu.core_type<tc>, window_params = [{transform_indices = @transform_0, window_bounds = array<i64: 128, 640>}, {transform_indices = @transform_1, window_bounds = array<i64: 384, 640>}, {transform_indices = @transform_2, window_bounds = array<i64: 1, 384>}, {transform_indices = @transform_3, window_bounds = array<i64: 128, 384>}]} {
    %c0 = arith.constant 0 : index
    %c0_0 = arith.constant 0 : index
    %0 = vector.load %arg3[%c0, %c0_0] : memref<128x640xf32, #tpu.memory_space<vmem>>, vector<128x640xf32>
    %c0_1 = arith.constant 0 : index
    %c0_2 = arith.constant 0 : index
    %1 = vector.load %arg4[%c0_1, %c0_2] : memref<384x640xf32, #tpu.memory_space<vmem>>, vector<384x640xf32>
    %cst = arith.constant dense<0.000000e+00> : vector<128x384xf32>
    %2 = tpu.matmul %0, %1, %cst {dimension_numbers = #tpu.dot_dimension_numbers<[1], [1], [0], [0], [0, 0, 1, 0], [], []>} : vector<128x640xf32>, vector<384x640xf32>, vector<128x384xf32> -> vector<128x384xf32>
    %c0_3 = arith.constant 0 : index
    %c0_4 = arith.constant 0 : index
    %3 = vector.load %arg5[%c0_3, %c0_4] : memref<1x384xf32, #tpu.memory_space<vmem>>, vector<1x384xf32>
    %4 = vector.broadcast %3 : vector<1x384xf32> to vector<128x384xf32>
    %5 = arith.addf %2, %4 : vector<128x384xf32>
    %c0_5 = arith.constant 0 : index
    %c0_6 = arith.constant 0 : index
    %6 = vector.load %arg6[%c0_5, %c0_6] : memref<128x384xf32, #tpu.memory_space<vmem>>, vector<128x384xf32>
    tpu.vector_store %arg6[%c0_5, %c0_6], %5 {strides = array<i32>} : memref<128x384xf32, #tpu.memory_space<vmem>>, vector<128x384xf32>,
    return
  }
  func.func @transform_0(%arg0: i32, %arg1: i32, %arg2: i32) -> (i32, i32) {
    %c0_i32 = arith.constant 0 : i32
    return %arg0, %arg2 : i32, i32
  }
  func.func @transform_1(%arg0: i32, %arg1: i32, %arg2: i32) -> (i32, i32) {
    %c0_i32 = arith.constant 0 : i32
    return %arg1, %arg2 : i32, i32
  }
  func.func @transform_2(%arg0: i32, %arg1: i32, %arg2: i32) -> (i32, i32) {
    %c0_i32 = arith.constant 0 : i32
    %c0_i32_0 = arith.constant 0 : i32
    return %c0_i32, %arg1 : i32, i32
  }
  func.func @transform_3(%arg0: i32, %arg1: i32, %arg2: i32) -> (i32, i32) {
    %c0_i32 = arith.constant 0 : i32
    return %arg0, %arg1 : i32, i32
  }
}

</mosaic_0001>

<bundles_post_ra>
// kernel: tpu_custom_call.1
= control target key start
LH: loop header
LB: loop body
LE: loop exit
PB: predicated region body
PF: predicated region fallthrough
CT: control target
= control target key end

     0   :  { %8 = vsyncpa [#allocation3], 0  ;;  %s3443_s0 = inlined_call_operand.hbm [shape: f32[256,640], index: 0, kind: input, shape index: {}]   ;;  %s3444_s1 = inlined_call_operand.hbm [shape: f32[384,640], index: 1, kind: input, shape index: {}]   ;;  %s3445_s2 = inlined_call_operand.hbm [shape: f32[1,384], index: 2, kind: input, shape index: {}]   ;;  %s3446_s3 = inlined_call_operand.hbm [shape: f32[256,384], index: 3, kind: output, shape index: {}]  }
   0x1   :  { %10 = vsyncpa [#allocation3 + $0x1], 0 }
   0x2   :  { %11 = vsyncpa [#allocation6], 0 }
   0x3   :  { %12 = vsyncpa [#allocation4], 0 }
   0x4   :  { %14 = vsyncpa [#allocation4 + $0x1], 0  ;;  %s2203_s12 = smov 0   ;;  %s2205_s13 = smov 0  }
   0x5   :  { %s2207_s14 = smov 0   ;;  %s2209_s15 = smov 0  }
   0x6   :  { %s2211_s16 = smov 0   ;;  %s2213_s17 = smov 0  }
   0x7 LB: > { %s1761_s18 = sadd.s32 4294967295, %s2175_s17   ;;  %s1762_s19 = sadd.s32 4294967294, %s2175_s17   ;;  %s2175_s17 = sphi %s2213_s17, %s20_s17   ;;  %s2171_s16 = sphi %s2211_s16, %s3583_s16   ;;  %s2167_s15 = sphi %s2209_s15, %s3582_s15   ;;  %s2163_s14 = sphi %s2207_s14, %s3581_s14   ;;  %s2159_s13 = sphi %s2205_s13, %s3580_s13   ;;  %s2155_s12 = sphi %s2203_s12, %s3579_s12  }
   0x8   : > { %p61_p0 = scmp.ne.s32.totalorder %s2159_s13, %s2155_s12  ;;  %p2237_p1 = scmp.eq.s32.totalorder %s1761_s18, 0 }
   0x9   : > { %p2241_p2 = scmp.eq.s32.totalorder %s1761_s18, 1  ;;  %p147_p3 = scmp.eq.s32.totalorder %s1762_s19, 1 }
   0xa   : > { %p2247_p4 = por %p2237_p1, %p61_p0  ;;  %p1763_p5 = scmp.ge.s32.totalorder %s2175_s17, 1 }
   0xb   : > { %p2252_p6 = por %p147_p3, %p61_p0  ;;  %p154_p7 = scmp.lt.s32.totalorder %s2175_s17, 3 }
   0xc   : > { %s171_s26 = sshll.u32 %s3444_s1, 4  ;;  %s2177_s28 = smov [#allocation5]   ;;  %s172_s26 = int_to_ptr.hbm [resolvable:$true] %s171_s26 }
   0xd   : > { %p2260_p8 = pnand %p1763_p5, %p154_p7  ;;  %s173_s29 = sshll.u32 %s2177_s28, 4  ;;  %s174_s29 = int_to_ptr.vmem [resolvable:$true] %s173_s29 }
   0xe   : > { %p1766_p11 = scmp.ge.s32.totalorder %s2175_s17, 2  ;;  %s188_s5 = sshll.u32 %s3445_s2, 4  ;;  %s189_s5 = int_to_ptr.hbm [resolvable:$true] %s188_s5 }
   0xf   : > { %p1843_p9 = pneg %p2260_p8  ;;  %s2178_s6 = smov 640  }
  0x10   : > { %s2179_s7 = smov 40   ;;  %s2180_s8 = smov [#allocation7]  }
  0x11   : > { %p1844_p10 = pnand %p1843_p9, %p2237_p1  ;;  %s190_s9 = sshll.u32 %s2180_s8, 4  ;;  %s191_s9 = int_to_ptr.vmem [resolvable:$true] %s190_s9 }
  0x12   : > { %s39_s10 = sadd.s32 1, %s2171_s16  ;;  %s48_s11 = sadd.s32 1, %s2163_s14 }
  0x13   : > { %1846 = dma.hbm_to_vmem [thread:$0]  (!%p1844_p10), %s172_s26, 30720, %s174_s29, [#allocation6], %s2178_s6, %s2178_s6, %s2179_s7  }
  0x14   : > { %1849 = dma.hbm_to_vmem [thread:$0]  (!%p1844_p10), %s189_s5, 48, %s191_s9, [#allocation6]  }
  0x15   : > { %p41_p12 = scmp.ge.s32.totalorder %s39_s10, 2  ;;  %p55_p13 = scmp.ne.s32.totalorder %s2163_s14, %s2159_s13 }
  0x16   : > { %p56_p0 = scmp.eq.s32.totalorder %s2175_s17, 0  ;;  %p1860_p3 = scmp.lt.s32.totalorder %s2175_s17, 2 }
  0x17   : > { %s3585_s10 = smov (%p41_p12, %s39_s10), 0  ;;  %p2285_p7 = por %p2241_p2, %p55_p13 }
  0x18   : > { %p57_p5 = por %p56_p0, %p55_p13  ;;  %s43_s19 = ssub.s32 %s2171_s16, %s3585_s10 }
  0x19   : > { %s201_s24 = sand.u32 1, %s2163_s14   ;;  %p46_p9 = scmp.eq.s32.totalorder %s43_s19, 0 }
  0x1a   : > { %s1826_s25 = smul.u32 640, %s201_s24  ;;  %p1851_p10 = pnand %p1860_p3, %p57_p5 }
  0x1b   : > { %s2293_s26 = scalar_select %p46_p9, %s2163_s14, %s48_s11  }
  0x1c   : > { %s1827_s28 = smul.u32 640, %s2171_s16  ;;  %s205_s29 = scalar_lea.vmem [#allocation2], %s1826_s25 }
  0x1d   : > { %s216_s30 = sshll.u32 %s205_s29, 4  ;;  %s202_s9 = scalar_lea.sflag [#allocation3], %s201_s24  ;;  %s217_s30 = int_to_ptr.vmem [resolvable:$true] %s216_s30 }
  0x1e   : > { %s213_s8 = scalar_lea.hbm %s3443_s0, %s1827_s28  ;;  %228 = sbr.rel (%p2260_p8) target bundleno = 719 (0x2cf), region = 32 }
  0x1f   : > { %s214_s21 = sshll.u32 %s213_s8, 4  ;;  %s215_s21 = int_to_ptr.hbm [resolvable:$true] %s214_s21 }
  0x20   : > { %1853 = dma.hbm_to_vmem [thread:$0]  (!%p1851_p10), %s215_s21, 10240, %s217_s30, %s202_s9, %s2178_s6, %s2178_s6, %s2179_s7  }
  0x23   : > { %s2305_s11 = sand.u32 1, %s2159_s13  }
  0x24   : > { %s1828_s19 = smul.u32 640, %s2305_s11  ;;  %s231_s25 = scalar_lea.sflag [#allocation3], %s2305_s11 }
  0x26   : > { %s2309_s28 = scalar_lea.vmem [#allocation2], %s1828_s19 }
  0x27   : > { %2142 = dma.done.wait (%p2247_p4), %s231_s25, 10240  }
  0x28   : > { %2144 = vsyncadd (%p2247_p4), %s231_s25, 4294957056 }
  0x29   : > { %2146 = dma.done.wait (%p2237_p1), [#allocation6], 30768  }
  0x2a   : > { %2148 = vsyncadd (%p2237_p1), [#allocation6], 4294936528  ;;  %v430_v0 = vld [vmem:[#allocation5 + $0x258] sm:$0xff]  ;;  %v431_v1 = vld [vmem:[#allocation5 + $0x260] sm:$0xff]  ;;  %s1829_s20 = smul.u32 384, %s2305_s11  ;;  %s1627_s30 = scalar_lea.sflag [#allocation4], %s2305_s11 }
  0x2b   : > { %v432_v2 = vld [vmem:[#allocation5 + $0x268] sm:$0xff]  ;;  %603 = vmatpush.xpose.msra.mxu0 %v430_v0  ;;  %1778 = vmatpush.xpose.msra.mxu3 %v430_v0  ;;  %v425_v3 = vld [vmem:[#allocation5 + $0x230] sm:$0xff]  ;;  %v426_v4 = vld [vmem:[#allocation5 + $0x238] sm:$0xff]  ;;  %s1830_s27 = smul.u32 384, %s2167_s15  ;;  %s2109_s9 = scalar_lea.hbm %s3446_s3, 768 }
  0x2c   : > { %668 = vmatpush.xpose.msra.mxu1 %v431_v1  ;;  %733 = vmatpush.xpose.msra.mxu2 %v432_v2  ;;  %v427_v5 = vld [vmem:[#allocation5 + $0x240] sm:$0xff]  ;;  %v420_v6 = vld [vmem:[#allocation5 + $0x208] sm:$0xff]  ;;  %v421_v7 = vld [vmem:[#allocation5 + $0x210] sm:$0xff]  ;;  %s2749_s22 = scalar_lea.vmem [#allocation8], %s1829_s20 }
  0x2d   : > { %v422_v8 = vld [vmem:[#allocation5 + $0x218] sm:$0xff]  ;;  %v415_v9 = vld [vmem:[#allocation5 + $0x1e0] sm:$0xff]  ;;  %v416_v10 = vld [vmem:[#allocation5 + $0x1e8] sm:$0xff]  ;;  %s1641_s24 = scalar_lea.hbm %s3446_s3, %s1830_s27  ;;  %s1642_s15 = sshll.u32 %s2749_s22, 4  ;;  %s1643_s15 = int_to_ptr.vmem [resolvable:$true] %s1642_s15 }
  0x2e   : > { %v417_v11 = vld [vmem:[#allocation5 + $0x1f0] sm:$0xff]  ;;  %v410_v12 = vld [vmem:[#allocation5 + $0x1b8] sm:$0xff]  ;;  %v411_v13 = vld [vmem:[#allocation5 + $0x1c0] sm:$0xff]  ;;  %s1644_s29 = sshll.u32 %s1641_s24, 4  ;;  %s1645_s29 = int_to_ptr.hbm [resolvable:$true] %s1644_s29 }
  0x2f   : > { %604 = vmatpush.xpose.msra.mxu0 %v425_v3  ;;  %1779 = vmatpush.xpose.msra.mxu3 %v425_v3  ;;  %v412_v14 = vld [vmem:[#allocation5 + $0x1c8] sm:$0xff]  ;;  %v405_v15 = vld [vmem:[#allocation5 + $0x190] sm:$0xff]  ;;  %v406_v16 = vld [vmem:[#allocation5 + $0x198] sm:$0xff]  ;;  %s2103_s4 = sshra.s32 %s1645_s29, 4  ;;  %s2104_s4 = int_to_ptr.hbm [resolvable:$true] %s2103_s4 }
  0x30   : > { %669 = vmatpush.xpose.msra.mxu1 %v426_v4  ;;  %734 = vmatpush.xpose.msra.mxu2 %v427_v5  ;;  %v407_v17 = vld [vmem:[#allocation5 + $0x1a0] sm:$0xff]  ;;  %v400_v18 = vld [vmem:[#allocation5 + $0x168] sm:$0xff]  ;;  %v401_v19 = vld [vmem:[#allocation5 + $0x170] sm:$0xff]  ;;  %s2105_s5 = scalar_lea.hbm %s2104_s4, 384  ;;  %p2110_p8 = scmp.lt.s32.totalorder %s2104_s4, %s3446_s3 }
  0x31   : > { %v402_v20 = vld [vmem:[#allocation5 + $0x178] sm:$0xff]  ;;  %v395_v21 = vld [vmem:[#allocation5 + $0x140] sm:$0xff]  ;;  %v396_v22 = vld [vmem:[#allocation5 + $0x148] sm:$0xff]  ;;  %p2106_p1 = scmp.ne.s32.totalorder %s2104_s4, %s2105_s5  ;;  %p2111_p12 = scmp.lt.s32.totalorder %s2109_s9, %s2105_s5 }
  0x32   : > { %v397_v23 = vld [vmem:[#allocation5 + $0x150] sm:$0xff]  ;;  %v390_v24 = vld [vmem:[#allocation5 + $0x118] sm:$0xff]  ;;  %v391_v25 = vld [vmem:[#allocation5 + $0x120] sm:$0xff] }
  0x33   : > { %605 = vmatpush.xpose.msra.mxu0 %v420_v6  ;;  %1780 = vmatpush.xpose.msra.mxu3 %v420_v6  ;;  %v392_v26 = vld [vmem:[#allocation5 + $0x128] sm:$0xff]  ;;  %v385_v27 = vld [vmem:[#allocation5 + $0xf0] sm:$0xff]  ;;  %v386_v28 = vld [vmem:[#allocation5 + $0xf8] sm:$0xff]  ;;  %p2107_p2 = pnand %p2106_p1, %p2285_p7  ;;  %p2112_p13 = por %p2111_p12, %p2110_p8 }
  0x34   : > { %670 = vmatpush.xpose.msra.mxu1 %v421_v7  ;;  %735 = vmatpush.xpose.msra.mxu2 %v422_v8  ;;  %v387_v29 = vld [vmem:[#allocation5 + $0x100] sm:$0xff]  ;;  %v380_v30 = vld [vmem:[#allocation5 + $0xc8] sm:$0xff]  ;;  %v381_v31 = vld [vmem:[#allocation5 + $0xd0] sm:$0xff] }
  0x35   : > { %v382_v32 = vld [vmem:[#allocation5 + $0xd8] sm:$0xff]  ;;  %v375_v33 = vld [vmem:[#allocation5 + $0xa0] sm:$0xff]  ;;  %v376_v34 = vld [vmem:[#allocation5 + $0xa8] sm:$0xff]  ;;  %p2108_p4 = pneg %p2107_p2 }
  0x36   : > { %v377_v35 = vld [vmem:[#allocation5 + $0xb0] sm:$0xff]  ;;  %v370_v36 = vld [vmem:[#allocation5 + $0x78] sm:$0xff]  ;;  %v371_v37 = vld [vmem:[#allocation5 + $0x80] sm:$0xff] }
  0x37   : > { %606 = vmatpush.xpose.msra.mxu0 %v415_v9  ;;  %1781 = vmatpush.xpose.msra.mxu3 %v415_v9  ;;  %v372_v38 = vld [vmem:[#allocation5 + $0x88] sm:$0xff]  ;;  %v365_v39 = vld [vmem:[#allocation5 + $0x50] sm:$0xff]  ;;  %v366_v40 = vld [vmem:[#allocation5 + $0x58] sm:$0xff]  ;;  %p2113_p0 = pnand %p2112_p13, %p2108_p4 }
  0x38   : > { %671 = vmatpush.xpose.msra.mxu1 %v416_v10  ;;  %736 = vmatpush.xpose.msra.mxu2 %v417_v11  ;;  %v367_v41 = vld [vmem:[#allocation5 + $0x60] sm:$0xff]  ;;  %v360_v42 = vld [vmem:[#allocation5 + $0x28] sm:$0xff]  ;;  %v361_v43 = vld [vmem:[#allocation5 + $0x30] sm:$0xff] }
  0x39   : > { %v362_v44 = vld [vmem:[#allocation5 + $0x38] sm:$0xff]  ;;  %v355_v45 = vld [vmem:[#allocation5] sm:$0xff]  ;;  %v356_v46 = vld [vmem:[#allocation5 + $0x8] sm:$0xff] }
  0x3a   : > { %v357_v47 = vld [vmem:[#allocation5 + $0x10] sm:$0xff]  ;;  %v511_v49 = vld [vmem:[#allocation5 + $0x4e0] sm:$0xff]  ;;  %v2326_v52 = vld [vmem:[%s2309_s28 + $0x8] sm:$0xff] }
  0x3b   : > { %607 = vmatpush.xpose.msra.mxu0 %v410_v12  ;;  %1782 = vmatpush.xpose.msra.mxu3 %v410_v12  ;;  %v433_v48 = vld [vmem:[#allocation5 + $0x270] sm:$0xff]  ;;  %v2320_v50 = vld [vmem:[%s2309_s28] sm:$0xff]  ;;  %v434_v54 = vld [vmem:[#allocation5 + $0x278] sm:$0xff] }
  0x3c   : > { %672 = vmatpush.xpose.msra.mxu1 %v411_v13  ;;  %737 = vmatpush.xpose.msra.mxu2 %v412_v14  ;;  %v2323_v51 = vld [vmem:[%s2309_s28 + $0x140] sm:$0xff]  ;;  %v2329_v53 = vld [vmem:[%s2309_s28 + $0x10] sm:$0xff]  ;;  %v510_v55 = vld [vmem:[#allocation5 + $0x4d8] sm:$0xff] }
  0x3d   : > { %v428_v56 = vld [vmem:[#allocation5 + $0x248] sm:$0xff]  ;;  %v506_v57 = vld [vmem:[#allocation5 + $0x4b8] sm:$0xff]  ;;  %v429_v58 = vld [vmem:[#allocation5 + $0x250] sm:$0xff] }
  0x3e   : > { %v505_v59 = vld [vmem:[#allocation5 + $0x4b0] sm:$0xff]  ;;  %v423_v60 = vld [vmem:[#allocation5 + $0x220] sm:$0xff]  ;;  %v2336_v62 = vld [vmem:[%s2309_s28 + $0x28] sm:$0xff] }
  0x3f   : > { %608 = vmatpush.xpose.msra.mxu0 %v405_v15  ;;  %1783 = vmatpush.xpose.msra.mxu3 %v405_v15  ;;  %v501_v61 = vld [vmem:[#allocation5 + $0x490] sm:$0xff]  ;;  %v2339_v63 = vld [vmem:[%s2309_s28 + $0x168] sm:$0xff]  ;;  %v2345_v1 = vld [vmem:[%s2309_s28 + $0x38] sm:$0xff] }
  0x40   : > { %673 = vmatpush.xpose.msra.mxu1 %v406_v16  ;;  %738 = vmatpush.xpose.msra.mxu2 %v407_v17  ;;  %v2342_v0 = vld [vmem:[%s2309_s28 + $0x30] sm:$0xff]  ;;  %v424_v2 = vld [vmem:[#allocation5 + $0x228] sm:$0xff]  ;;  %v418_v4 = vld [vmem:[#allocation5 + $0x1f8] sm:$0xff] }
  0x41   : > { %v500_v3 = vld [vmem:[#allocation5 + $0x488] sm:$0xff]  ;;  %v419_v6 = vld [vmem:[#allocation5 + $0x200] sm:$0xff]  ;;  %v413_v8 = vld [vmem:[#allocation5 + $0x1d0] sm:$0xff] }
  0x42   : > { %v496_v5 = vld [vmem:[#allocation5 + $0x468] sm:$0xff]  ;;  %v495_v7 = vld [vmem:[#allocation5 + $0x460] sm:$0xff]  ;;  %v2352_v10 = vld [vmem:[%s2309_s28 + $0x50] sm:$0xff] }
  0x43   : > { %609 = vmatpush.xpose.msra.mxu0 %v400_v18  ;;  %1784 = vmatpush.xpose.msra.mxu3 %v400_v18  ;;  %v491_v9 = vld [vmem:[#allocation5 + $0x440] sm:$0xff]  ;;  %v2355_v11 = vld [vmem:[%s2309_s28 + $0x190] sm:$0xff]  ;;  %v2358_v12 = vld [vmem:[%s2309_s28 + $0x58] sm:$0xff] }
  0x44   : > { %674 = vmatpush.xpose.msra.mxu1 %v401_v19  ;;  %739 = vmatpush.xpose.msra.mxu2 %v402_v20  ;;  %v2361_v13 = vld [vmem:[%s2309_s28 + $0x60] sm:$0xff]  ;;  %v414_v14 = vld [vmem:[#allocation5 + $0x1d8] sm:$0xff]  ;;  %v408_v16 = vld [vmem:[#allocation5 + $0x1a8] sm:$0xff] }
  0x45   : > { %v490_v15 = vld [vmem:[#allocation5 + $0x438] sm:$0xff]  ;;  %v409_v18 = vld [vmem:[#allocation5 + $0x1b0] sm:$0xff]  ;;  %v403_v20 = vld [vmem:[#allocation5 + $0x180] sm:$0xff] }
  0x46   : > { %v486_v17 = vld [vmem:[#allocation5 + $0x418] sm:$0xff]  ;;  %v485_v19 = vld [vmem:[#allocation5 + $0x410] sm:$0xff] }
  0x47   : > { %610 = vmatpush.xpose.msra.mxu0 %v395_v21  ;;  %1785 = vmatpush.xpose.msra.mxu3 %v395_v21  ;;  %v481_v21 = vld [vmem:[#allocation5 + $0x3f0] sm:$0xff] }
  0x48   : > { %675 = vmatpush.xpose.msra.mxu1 %v396_v22  ;;  %740 = vmatpush.xpose.msra.mxu2 %v397_v23  ;;  %v2368_v22 = vld [vmem:[%s2309_s28 + $0x78] sm:$0xff] }
  0x49   : > { %v2371_v23 = vld [vmem:[%s2309_s28 + $0x1b8] sm:$0xff] }
  0x4b   : > { %611 = vmatpush.xpose.msra.mxu0 %v390_v24  ;;  %1786 = vmatpush.xpose.msra.mxu3 %v390_v24  ;;  %v2374_v24 = vld [vmem:[%s2309_s28 + $0x80] sm:$0xff] }
  0x4c   : > { %676 = vmatpush.xpose.msra.mxu1 %v391_v25  ;;  %741 = vmatpush.xpose.msra.mxu2 %v392_v26  ;;  %v2377_v25 = vld [vmem:[%s2309_s28 + $0x88] sm:$0xff] }
  0x4d   : > { %v404_v26 = vld [vmem:[#allocation5 + $0x188] sm:$0xff] }
  0x4f   : > { %612 = vmatpush.xpose.msra.mxu0 %v385_v27  ;;  %1787 = vmatpush.xpose.msra.mxu3 %v385_v27  ;;  %v480_v27 = vld [vmem:[#allocation5 + $0x3e8] sm:$0xff] }
  0x50   : > { %677 = vmatpush.xpose.msra.mxu1 %v386_v28  ;;  %742 = vmatpush.xpose.msra.mxu2 %v387_v29  ;;  %v398_v28 = vld [vmem:[#allocation5 + $0x158] sm:$0xff]  ;;  %v476_v29 = vld [vmem:[#allocation5 + $0x3c8] sm:$0xff] }
  0x53   : > { %613 = vmatpush.xpose.msra.mxu0 %v380_v30  ;;  %1788 = vmatpush.xpose.msra.mxu3 %v380_v30  ;;  %v399_v30 = vld [vmem:[#allocation5 + $0x160] sm:$0xff] }
  0x54   : > { %678 = vmatpush.xpose.msra.mxu1 %v381_v31  ;;  %743 = vmatpush.xpose.msra.mxu2 %v382_v32  ;;  %v475_v31 = vld [vmem:[#allocation5 + $0x3c0] sm:$0xff]  ;;  %v393_v32 = vld [vmem:[#allocation5 + $0x130] sm:$0xff] }
  0x57   : > { %614 = vmatpush.xpose.msra.mxu0 %v375_v33  ;;  %1789 = vmatpush.xpose.msra.mxu3 %v375_v33  ;;  %v2384_v33 = vld [vmem:[%s2309_s28 + $0xa0] sm:$0xff] }
  0x58   : > { %679 = vmatpush.xpose.msra.mxu1 %v376_v34  ;;  %744 = vmatpush.xpose.msra.mxu2 %v377_v35  ;;  %v2387_v34 = vld [vmem:[%s2309_s28 + $0x1e0] sm:$0xff]  ;;  %v2390_v35 = vld [vmem:[%s2309_s28 + $0xa8] sm:$0xff] }
  0x5b   : > { %615 = vmatpush.xpose.msra.mxu0 %v370_v36  ;;  %1790 = vmatpush.xpose.msra.mxu3 %v370_v36  ;;  %v2393_v36 = vld [vmem:[%s2309_s28 + $0xb0] sm:$0xff] }
  0x5c   : > { %680 = vmatpush.xpose.msra.mxu1 %v371_v37  ;;  %745 = vmatpush.xpose.msra.mxu2 %v372_v38  ;;  %v394_v37 = vld [vmem:[#allocation5 + $0x138] sm:$0xff]  ;;  %v388_v38 = vld [vmem:[#allocation5 + $0x108] sm:$0xff] }
  0x5f   : > { %616 = vmatpush.xpose.msra.mxu0 %v365_v39  ;;  %1791 = vmatpush.xpose.msra.mxu3 %v365_v39  ;;  %v471_v39 = vld [vmem:[#allocation5 + $0x3a0] sm:$0xff] }
  0x60   : > { %681 = vmatpush.xpose.msra.mxu1 %v366_v40  ;;  %746 = vmatpush.xpose.msra.mxu2 %v367_v41  ;;  %v470_v40 = vld [vmem:[#allocation5 + $0x398] sm:$0xff]  ;;  %v389_v41 = vld [vmem:[#allocation5 + $0x110] sm:$0xff] }
  0x63   : > { %617 = vmatpush.xpose.msra.mxu0 %v360_v42  ;;  %1792 = vmatpush.xpose.msra.mxu3 %v360_v42  ;;  %v383_v42 = vld [vmem:[#allocation5 + $0xe0] sm:$0xff] }
  0x64   : > { %682 = vmatpush.xpose.msra.mxu1 %v361_v43  ;;  %747 = vmatpush.xpose.msra.mxu2 %v362_v44  ;;  %v2400_v43 = vld [vmem:[%s2309_s28 + $0xc8] sm:$0xff] }
  0x65   : > { %v2403_v44 = vld [vmem:[%s2309_s28 + $0x208] sm:$0xff] }
  0x67   : > { %618 = vmatpush.xpose.msra.mxu0 %v355_v45  ;;  %1793 = vmatpush.xpose.msra.mxu3 %v355_v45  ;;  %v2406_v45 = vld [vmem:[%s2309_s28 + $0xd0] sm:$0xff] }
  0x68   : > { %683 = vmatpush.xpose.msra.mxu1 %v356_v46  ;;  %748 = vmatpush.xpose.msra.mxu2 %v357_v47  ;;  %v2409_v46 = vld [vmem:[%s2309_s28 + $0xd8] sm:$0xff]  ;;  %v384_v47 = vld [vmem:[#allocation5 + $0xe8] sm:$0xff] }
  0x6a   : > { %619 = vmatmul.f32.vlgmr.msra.gmra.mxu0 %v2320_v50  ;;  %643 = vmatmul.f32.vlgmr.msra.gmra.mxu3 %v2323_v51 }
  0x6b   : > { %798 = vmatpush.xpose.msrb.mxu3 %v433_v48  ;;  %684 = vmatmul.f32.vlgmr.msra.gmra.mxu1 %v2326_v52  ;;  %v378_v48 = vld [vmem:[#allocation5 + $0xb8] sm:$0xff] }
  0x6c   : > { %993 = vmatpush.xpose.msrb.mxu2 %v511_v49  ;;  %863 = vmatpush.xpose.msrb.mxu0 %v434_v54  ;;  %v466_v49 = vld [vmem:[#allocation5 + $0x378] sm:$0xff]  ;;  %v465_v54 = vld [vmem:[#allocation5 + $0x370] sm:$0xff] }
  0x6d   : > { %749 = vmatmul.f32.vlgmr.msra.gmra.mxu2 %v2329_v53  ;;  %928 = vmatpush.xpose.msrb.mxu1 %v510_v55  ;;  %v379_v55 = vld [vmem:[#allocation5 + $0xc0] sm:$0xff] }
  0x6f   : > { %799 = vmatpush.xpose.msrb.mxu3 %v428_v56  ;;  %v373_v56 = vld [vmem:[#allocation5 + $0x90] sm:$0xff] }
  0x70   : > { %994 = vmatpush.xpose.msrb.mxu2 %v506_v57  ;;  %864 = vmatpush.xpose.msrb.mxu0 %v429_v58  ;;  %v2416_v57 = vld [vmem:[%s2309_s28 + $0xf0] sm:$0xff] }
  0x71   : > { %929 = vmatpush.xpose.msrb.mxu1 %v505_v59  ;;  %v2419_v58 = vld [vmem:[%s2309_s28 + $0x230] sm:$0xff]  ;;  %v2422_v59 = vld [vmem:[%s2309_s28 + $0xf8] sm:$0xff] }
  0x72   : > { %622 = vmatmul.f32.gmra.mxu0 %v2336_v62  ;;  %646 = vmatmul.f32.gmra.mxu3 %v2339_v63  ;;  %3493 = vst [vmem:[#allocation12_spill] sm:$0xff] %v2419_v58 }
  0x73   : > { %800 = vmatpush.xpose.msrb.mxu3 %v423_v60  ;;  %687 = vmatmul.f32.gmra.mxu1 %v2342_v0  ;;  %v2425_v60 = vld [vmem:[%s2309_s28 + $0x100] sm:$0xff] }
  0x74   : > { %995 = vmatpush.xpose.msrb.mxu2 %v501_v61  ;;  %865 = vmatpush.xpose.msrb.mxu0 %v424_v2  ;;  %3494 = vst [vmem:[#allocation13_spill] sm:$0xff] %v2425_v60  ;;  %v374_v61 = vld [vmem:[#allocation5 + $0x98] sm:$0xff]  ;;  %v368_v2 = vld [vmem:[#allocation5 + $0x68] sm:$0xff] }
  0x75   : > { %752 = vmatmul.f32.gmra.mxu2 %v2345_v1  ;;  %930 = vmatpush.xpose.msrb.mxu1 %v500_v3  ;;  %v461_v3 = vld [vmem:[#allocation5 + $0x350] sm:$0xff] }
  0x77   : > { %801 = vmatpush.xpose.msrb.mxu3 %v418_v4  ;;  %v460_v4 = vld [vmem:[#allocation5 + $0x348] sm:$0xff] }
  0x78   : > { %996 = vmatpush.xpose.msrb.mxu2 %v496_v5  ;;  %866 = vmatpush.xpose.msrb.mxu0 %v419_v6  ;;  %v369_v5 = vld [vmem:[#allocation5 + $0x70] sm:$0xff]  ;;  %v363_v6 = vld [vmem:[#allocation5 + $0x40] sm:$0xff] }
  0x79   : > { %931 = vmatpush.xpose.msrb.mxu1 %v495_v7  ;;  %v2432_v7 = vld [vmem:[%s2309_s28 + $0x118] sm:$0xff] }
  0x7a   : > { %625 = vmatmul.f32.gmra.mxu0 %v2352_v10  ;;  %649 = vmatmul.f32.gmra.mxu3 %v2355_v11 }
  0x7b   : > { %802 = vmatpush.xpose.msrb.mxu3 %v413_v8  ;;  %690 = vmatmul.f32.gmra.mxu1 %v2358_v12  ;;  %v2435_v8 = vld [vmem:[%s2309_s28 + $0x258] sm:$0xff] }
  0x7c   : > { %997 = vmatpush.xpose.msrb.mxu2 %v491_v9  ;;  %867 = vmatpush.xpose.msrb.mxu0 %v414_v14  ;;  %3495 = vst [vmem:[#allocation14_spill] sm:$0xff] %v2435_v8  ;;  %v2438_v9 = vld [vmem:[%s2309_s28 + $0x120] sm:$0xff]  ;;  %v2441_v14 = vld [vmem:[%s2309_s28 + $0x128] sm:$0xff] }
  0x7d   : > { %755 = vmatmul.f32.gmra.mxu2 %v2361_v13  ;;  %932 = vmatpush.xpose.msrb.mxu1 %v490_v15  ;;  %3496 = vst [vmem:[#allocation15_spill] sm:$0xff] %v2441_v14  ;;  %v364_v15 = vld [vmem:[#allocation5 + $0x48] sm:$0xff] }
  0x7f   : > { %803 = vmatpush.xpose.msrb.mxu3 %v408_v16  ;;  %v358_v16 = vld [vmem:[#allocation5 + $0x18] sm:$0xff] }
  0x80   : > { %998 = vmatpush.xpose.msrb.mxu2 %v486_v17  ;;  %868 = vmatpush.xpose.msrb.mxu0 %v409_v18  ;;  %v512_v17 = vld [vmem:[#allocation5 + $0x4e8] sm:$0xff] }
  0x81   : > { %933 = vmatpush.xpose.msrb.mxu1 %v485_v19  ;;  %v456_v18 = vld [vmem:[#allocation5 + $0x328] sm:$0xff]  ;;  %v455_v19 = vld [vmem:[#allocation5 + $0x320] sm:$0xff] }
  0x82   : > { %628 = vmatmul.f32.gmra.mxu0 %v2368_v22  ;;  %652 = vmatmul.f32.gmra.mxu3 %v2371_v23 }
  0x83   : > { %804 = vmatpush.xpose.msrb.mxu3 %v403_v20  ;;  %693 = vmatmul.f32.gmra.mxu1 %v2374_v24  ;;  %v359_v20 = vld [vmem:[#allocation5 + $0x20] sm:$0xff] }
  0x84   : > { %999 = vmatpush.xpose.msrb.mxu2 %v481_v21  ;;  %869 = vmatpush.xpose.msrb.mxu0 %v404_v26  ;;  %v513_v21 = vld [vmem:[#allocation5 + $0x4f0] sm:$0xff]  ;;  %v2448_v26 = vld [vmem:[%s2309_s28 + $0x18] sm:$0xff] }
  0x85   : > { %758 = vmatmul.f32.gmra.mxu2 %v2377_v25  ;;  %934 = vmatpush.xpose.msrb.mxu1 %v480_v27  ;;  %v2451_v27 = vld [vmem:[%s2309_s28 + $0x148] sm:$0xff] }
  0x87   : > { %805 = vmatpush.xpose.msrb.mxu3 %v398_v28  ;;  %v2454_v28 = vld [vmem:[%s2309_s28 + $0x150] sm:$0xff] }
  0x88   : > { %1000 = vmatpush.xpose.msrb.mxu2 %v476_v29  ;;  %870 = vmatpush.xpose.msrb.mxu0 %v399_v30  ;;  %3497 = vst [vmem:[#allocation16_spill] sm:$0xff] %v2454_v28  ;;  %v2457_v29 = vld [vmem:[%s2309_s28 + $0x20] sm:$0xff] }
  0x89   : > { %935 = vmatpush.xpose.msrb.mxu1 %v475_v31  ;;  %3498 = vst [vmem:[#allocation17_spill] sm:$0xff] %v2457_v29  ;;  %v507_v30 = vld [vmem:[#allocation5 + $0x4c0] sm:$0xff]  ;;  %v508_v31 = vld [vmem:[#allocation5 + $0x4c8] sm:$0xff] }
  0x8a   : > { %631 = vmatmul.f32.gmra.mxu0 %v2384_v33  ;;  %655 = vmatmul.f32.gmra.mxu3 %v2387_v34 }
  0x8b   : > { %806 = vmatpush.xpose.msrb.mxu3 %v393_v32  ;;  %696 = vmatmul.f32.gmra.mxu1 %v2390_v35  ;;  %v451_v32 = vld [vmem:[#allocation5 + $0x300] sm:$0xff] }
  0x8c   : > { %871 = vmatpush.xpose.msrb.mxu0 %v394_v37  ;;  %1001 = vmatpush.xpose.msrb.mxu2 %v471_v39  ;;  %v450_v37 = vld [vmem:[#allocation5 + $0x2f8] sm:$0xff]  ;;  %v503_v39 = vld [vmem:[#allocation5 + $0x4a0] sm:$0xff] }
  0x8d   : > { %761 = vmatmul.f32.gmra.mxu2 %v2393_v36  ;;  %936 = vmatpush.xpose.msrb.mxu1 %v470_v40  ;;  %v2464_v40 = vld [vmem:[%s2309_s28 + $0x40] sm:$0xff] }
  0x8f   : > { %807 = vmatpush.xpose.msrb.mxu3 %v388_v38  ;;  %v502_v38 = vld [vmem:[#allocation5 + $0x498] sm:$0xff] }
  0x90   : > { %872 = vmatpush.xpose.msrb.mxu0 %v389_v41  ;;  %1002 = vmatpush.xpose.msrb.mxu2 %v466_v49  ;;  %v2467_v41 = vld [vmem:[%s2309_s28 + $0x170] sm:$0xff]  ;;  %v498_v49 = vld [vmem:[#allocation5 + $0x478] sm:$0xff] }
  0x91   : > { %937 = vmatpush.xpose.msrb.mxu1 %v465_v54  ;;  %v446_v54 = vld [vmem:[#allocation5 + $0x2d8] sm:$0xff] }
  0x92   : > { %634 = vmatmul.f32.gmra.mxu0 %v2400_v43  ;;  %658 = vmatmul.f32.gmra.mxu3 %v2403_v44 }
  0x93   : > { %808 = vmatpush.xpose.msrb.mxu3 %v383_v42  ;;  %699 = vmatmul.f32.gmra.mxu1 %v2406_v45  ;;  %v2470_v42 = vld [vmem:[%s2309_s28 + $0x178] sm:$0xff] }
  0x94   : > { %873 = vmatpush.xpose.msrb.mxu0 %v384_v47  ;;  %1003 = vmatpush.xpose.msrb.mxu2 %v461_v3  ;;  %3499 = vst [vmem:[#allocation18_spill] sm:$0xff] %v2470_v42  ;;  %v2473_v47 = vld [vmem:[%s2309_s28 + $0x48] sm:$0xff]  ;;  %v2483_v3 = vld [vmem:[%s2309_s28 + $0x198] sm:$0xff] }
  0x95   : > { %764 = vmatmul.f32.gmra.mxu2 %v2409_v46  ;;  %938 = vmatpush.xpose.msrb.mxu1 %v460_v4  ;;  %3500 = vst [vmem:[#allocation19_spill] sm:$0xff] %v2473_v47  ;;  %v2486_v4 = vld [vmem:[%s2309_s28 + $0x1a0] sm:$0xff] }
  0x96   : > { %3501 = vst [vmem:[#allocation20_spill] sm:$0xff] %v2486_v4 }
  0x97   : > { %809 = vmatpush.xpose.msrb.mxu3 %v378_v48  ;;  %v497_v48 = vld [vmem:[#allocation5 + $0x470] sm:$0xff] }
  0x98   : > { %874 = vmatpush.xpose.msrb.mxu0 %v379_v55  ;;  %1004 = vmatpush.xpose.msrb.mxu2 %v456_v18  ;;  %v445_v55 = vld [vmem:[#allocation5 + $0x2d0] sm:$0xff]  ;;  %v482_v18 = vld [vmem:[#allocation5 + $0x3f8] sm:$0xff] }
  0x99   : > { %939 = vmatpush.xpose.msrb.mxu1 %v455_v19  ;;  %v483_v19 = vld [vmem:[#allocation5 + $0x400] sm:$0xff] }
  0x9a   : > { %637 = vmatmul.f32.gmra.mxu0 %v2416_v57  ;;  %661 = vmatmul.f32.gmra.mxu3 %v2419_v58  ;;  %v2694_v58 = vld [vmem:[%s2309_s28 + $0x248] sm:$0xff] }
  0x9b   : > { %810 = vmatpush.xpose.msrb.mxu3 %v373_v56  ;;  %702 = vmatmul.f32.gmra.mxu1 %v2422_v59  ;;  %v492_v56 = vld [vmem:[#allocation5 + $0x448] sm:$0xff]  ;;  %3529 = vst [vmem:[#allocation48_spill] sm:$0xff] %v2694_v58 }
  0x9c   : > { %875 = vmatpush.xpose.msrb.mxu0 %v374_v61  ;;  %1005 = vmatpush.xpose.msrb.mxu2 %v451_v32  ;;  %v493_v61 = vld [vmem:[#allocation5 + $0x450] sm:$0xff]  ;;  %v436_v32 = vld [vmem:[#allocation5 + $0x288] sm:$0xff] }
  0x9d   : > { %767 = vmatmul.f32.gmra.mxu2 %v2425_v60  ;;  %940 = vmatpush.xpose.msrb.mxu1 %v450_v37  ;;  %v477_v37 = vld [vmem:[#allocation5 + $0x3d0] sm:$0xff] }
  0x9f   : > { %811 = vmatpush.xpose.msrb.mxu3 %v368_v2  ;;  %v2480_v2 = vld [vmem:[%s2309_s28 + $0x68] sm:$0xff] }
  0xa0   : > { %876 = vmatpush.xpose.msrb.mxu0 %v369_v5  ;;  %1006 = vmatpush.xpose.msrb.mxu2 %v446_v54  ;;  %v2489_v5 = vld [vmem:[%s2309_s28 + $0x70] sm:$0xff] }
  0xa1   : > { %941 = vmatpush.xpose.msrb.mxu1 %v445_v55  ;;  %3502 = vst [vmem:[#allocation21_spill] sm:$0xff] %v2489_v5  ;;  %v2518_v54 = vld [vmem:[%s2309_s28 + $0x1f0] sm:$0xff]  ;;  %v2521_v55 = vld [vmem:[%s2309_s28 + $0xc0] sm:$0xff] }
  0xa2   : > { %640 = vmatmul.f32.gmra.mxu0 %v2432_v7  ;;  %664 = vmatmul.f32.gmra.mxu3 %v2435_v8  ;;  %3505 = vst [vmem:[#allocation24_spill] sm:$0xff] %v2518_v54 }
  0xa3   : > { %812 = vmatpush.xpose.msrb.mxu3 %v363_v6  ;;  %705 = vmatmul.f32.gmra.mxu1 %v2438_v9  ;;  %v487_v6 = vld [vmem:[#allocation5 + $0x420] sm:$0xff]  ;;  %3506 = vst [vmem:[#allocation25_spill] sm:$0xff] %v2521_v55 }
  0xa4   : > { %877 = vmatpush.xpose.msrb.mxu0 %v364_v15  ;;  %v488_v15 = vld [vmem:[#allocation5 + $0x428] sm:$0xff] }
  0xa5   : > { %770 = vmatmul.f32.gmra.mxu2 %v2441_v14  ;;  %v2675_v14 = vld [vmem:[%s2309_s28 + $0x220] sm:$0xff] }
  0xa6   : > { %3527 = vst [vmem:[#allocation46_spill] sm:$0xff] %v2675_v14 }
  0xa7   : > { %813 = vmatpush.xpose.msrb.mxu3 %v358_v16  ;;  %v441_v16 = vld [vmem:[#allocation5 + $0x2b0] sm:$0xff] }
  0xa8   : > { %878 = vmatpush.xpose.msrb.mxu0 %v359_v20  ;;  %1007 = vmatpush.xpose.msrb.mxu2 %v441_v16  ;;  %v2496_v20 = vld [vmem:[%s2309_s28 + $0x90] sm:$0xff]  ;;  %v514_v16 = vld [vmem:[#allocation5 + $0x4f8] sm:$0xff] }
  0xaa   : > { %814 = vmatmul.f32.vlgmr.msrb.gmra.mxu3 %v2448_v26 }
  0xab   : > { %1058 = vmatpush.xpose.msra.mxu3 %v512_v17  ;;  %708 = vmatmul.f32.gmra.mxu1 %v2451_v27  ;;  %v440_v17 = vld [vmem:[#allocation5 + $0x2a8] sm:$0xff] }
  0xac   : > { %1123 = vmatpush.xpose.msra.mxu0 %v513_v21  ;;  %942 = vmatpush.xpose.msrb.mxu1 %v440_v17  ;;  %v2499_v21 = vld [vmem:[%s2309_s28 + $0x1c0] sm:$0xff]  ;;  %v2531_v17 = vld [vmem:[%s2309_s28 + $0x210] sm:$0xff] }
  0xad   : > { %773 = vmatmul.f32.gmra.mxu2 %v2454_v28  ;;  %879 = vmatmul.f32.vlgmr.msrb.gmra.mxu0 %v2457_v29  ;;  %v484_v28 = vld [vmem:[#allocation5 + $0x408] sm:$0xff] }
  0xae   : > { %1008 = vmatpush.xpose.msrb.mxu2 %v436_v32  ;;  %v467_v32 = vld [vmem:[#allocation5 + $0x380] sm:$0xff] }
  0xaf   : > { %1059 = vmatpush.xpose.msra.mxu3 %v507_v30  ;;  %v2502_v30 = vld [vmem:[%s2309_s28 + $0x1c8] sm:$0xff] }
  0xb0   : > { %1124 = vmatpush.xpose.msra.mxu0 %v508_v31  ;;  %3503 = vst [vmem:[#allocation22_spill] sm:$0xff] %v2502_v30  ;;  %v2505_v31 = vld [vmem:[%s2309_s28 + $0x98] sm:$0xff] }
  0xb1   : > { %3504 = vst [vmem:[#allocation23_spill] sm:$0xff] %v2505_v31 }
  0xb2   : > { %817 = vmatmul.f32.gmra.mxu3 %v2464_v40 }
  0xb3   : > { %1060 = vmatpush.xpose.msra.mxu3 %v502_v38  ;;  %711 = vmatmul.f32.gmra.mxu1 %v2467_v41  ;;  %v435_v38 = vld [vmem:[#allocation5 + $0x280] sm:$0xff] }
  0xb4   : > { %1125 = vmatpush.xpose.msra.mxu0 %v503_v39  ;;  %v478_v39 = vld [vmem:[#allocation5 + $0x3d8] sm:$0xff]  ;;  %943 = vmatpush.xpose.msrb.mxu1 %v435_v38  ;;  %v2544_v38 = vld [vmem:[%s2309_s28 + $0x108] sm:$0xff] }
  0xb5   : > { %776 = vmatmul.f32.gmra.mxu2 %v2470_v42  ;;  %882 = vmatmul.f32.gmra.mxu0 %v2473_v47  ;;  %3509 = vst [vmem:[#allocation28_spill] sm:$0xff] %v2544_v38 }
  0xb7   : > { %1061 = vmatpush.xpose.msra.mxu3 %v497_v48  ;;  %v2512_v48 = vld [vmem:[%s2309_s28 + $0xb8] sm:$0xff] }
  0xb8   : > { %1126 = vmatpush.xpose.msra.mxu0 %v498_v49  ;;  %v2515_v49 = vld [vmem:[%s2309_s28 + $0x1e8] sm:$0xff]  ;;  %1188 = vmatpush.xpose.msra.mxu1 %v514_v16  ;;  %v2553_v16 = vld [vmem:[%s2309_s28 + $0x110] sm:$0xff] }
  0xb9   : > { %3512 = vst [vmem:[#allocation31_spill] sm:$0xff] %v2553_v16 }
  0xba   : > { %820 = vmatmul.f32.gmra.mxu3 %v2480_v2 }
  0xbb   : > { %1062 = vmatpush.xpose.msra.mxu3 %v492_v56  ;;  %714 = vmatmul.f32.gmra.mxu1 %v2483_v3  ;;  %v472_v56 = vld [vmem:[#allocation5 + $0x3a8] sm:$0xff] }
  0xbc   : > { %1127 = vmatpush.xpose.msra.mxu0 %v493_v61  ;;  %v590_v61 = vld [vmem:[#allocation5 + $0x758] sm:$0xff] }
  0xbd   : > { %779 = vmatmul.f32.gmra.mxu2 %v2486_v4  ;;  %885 = vmatmul.f32.gmra.mxu0 %v2489_v5  ;;  %v2583_v5 = vld [vmem:[%s2309_s28 + $0x160] sm:$0xff] }
  0xbe   : > { %1253 = vmatpush.xpose.msra.mxu2 %v590_v61  ;;  %v2547_v61 = vld [vmem:[%s2309_s28 + $0x238] sm:$0xff]  ;;  %3518 = vst [vmem:[#allocation37_spill] sm:$0xff] %v2583_v5 }
  0xbf   : > { %1063 = vmatpush.xpose.msra.mxu3 %v487_v6  ;;  %v2528_v6 = vld [vmem:[%s2309_s28 + $0xe0] sm:$0xff]  ;;  %3510 = vst [vmem:[#allocation29_spill] sm:$0xff] %v2547_v61 }
  0xc0   : > { %1128 = vmatpush.xpose.msra.mxu0 %v488_v15  ;;  %v473_v15 = vld [vmem:[#allocation5 + $0x3b0] sm:$0xff] }
  0xc2   : > { %823 = vmatmul.f32.gmra.mxu3 %v2496_v20 }
  0xc3   : > { %1064 = vmatpush.xpose.msra.mxu3 %v482_v18  ;;  %717 = vmatmul.f32.gmra.mxu1 %v2499_v21  ;;  %v2534_v18 = vld [vmem:[%s2309_s28 + $0x218] sm:$0xff] }
  0xc4   : > { %1129 = vmatpush.xpose.msra.mxu0 %v483_v19  ;;  %3507 = vst [vmem:[#allocation26_spill] sm:$0xff] %v2534_v18  ;;  %v2537_v19 = vld [vmem:[%s2309_s28 + $0xe8] sm:$0xff] }
  0xc5   : > { %782 = vmatmul.f32.gmra.mxu2 %v2502_v30  ;;  %888 = vmatmul.f32.gmra.mxu0 %v2505_v31  ;;  %3508 = vst [vmem:[#allocation27_spill] sm:$0xff] %v2537_v19  ;;  %v595_v30 = vld [vmem:[#allocation7] sm:$0x7] }
  0xc7   : > { %1065 = vmatpush.xpose.msra.mxu3 %v477_v37  ;;  %v585_v37 = vld [vmem:[#allocation5 + $0x730] sm:$0xff] }
  0xc8   : > { %1130 = vmatpush.xpose.msra.mxu0 %v478_v39  ;;  %1254 = vmatpush.xpose.msra.mxu2 %v585_v37  ;;  %v468_v39 = vld [vmem:[#allocation5 + $0x388] sm:$0xff] }
  0xc9   : > { %v580_v37 = vld [vmem:[#allocation5 + $0x708] sm:$0xff] }
  0xca   : > { %826 = vmatmul.f32.gmra.mxu3 %v2512_v48 }
  0xcb   : > { %720 = vmatmul.f32.gmra.mxu1 %v2515_v49  ;;  %1066 = vmatpush.xpose.msra.mxu3 %v472_v56  ;;  %v509_v56 = vld [vmem:[#allocation5 + $0x4d0] sm:$0xff] }
  0xcc   : > { %1131 = vmatpush.xpose.msra.mxu0 %v473_v15  ;;  %v2550_v15 = vld [vmem:[%s2309_s28 + $0x240] sm:$0xff]  ;;  %1189 = vmatpush.xpose.msra.mxu1 %v509_v56 }
  0xcd   : > { %785 = vmatmul.f32.gmra.mxu2 %v2518_v54  ;;  %891 = vmatmul.f32.gmra.mxu0 %v2521_v55  ;;  %3511 = vst [vmem:[#allocation30_spill] sm:$0xff] %v2550_v15  ;;  %v2563_v56 = vld [vmem:[%s2309_s28 + $0x260] sm:$0xff]  ;;  %v2566_v55 = vld [vmem:[%s2309_s28 + $0x268] sm:$0xff]  ;;  %v2569_v54 = vld [vmem:[%s2309_s28 + $0x138] sm:$0xff] }
  0xce   : > { %1255 = vmatpush.xpose.msra.mxu2 %v580_v37  ;;  %3514 = vst [vmem:[#allocation33_spill] sm:$0xff] %v2563_v56  ;;  %v575_v37 = vld [vmem:[#allocation5 + $0x6e0] sm:$0xff] }
  0xcf   : > { %1067 = vmatpush.xpose.msra.mxu3 %v467_v32  ;;  %v462_v32 = vld [vmem:[#allocation5 + $0x358] sm:$0xff]  ;;  %3515 = vst [vmem:[#allocation34_spill] sm:$0xff] %v2566_v55 }
  0xd0   : > { %1132 = vmatpush.xpose.msra.mxu0 %v468_v39  ;;  %v504_v39 = vld [vmem:[#allocation5 + $0x4a8] sm:$0xff]  ;;  %3516 = vst [vmem:[#allocation35_spill] sm:$0xff] %v2569_v54 }
  0xd1   : > { %1190 = vmatpush.xpose.msra.mxu1 %v504_v39  ;;  %v499_v39 = vld [vmem:[#allocation5 + $0x480] sm:$0xff] }
  0xd2   : > { %829 = vmatmul.f32.gmra.mxu3 %v2528_v6  ;;  %1256 = vmatpush.xpose.msra.mxu2 %v575_v37  ;;  %v452_v37 = vld [vmem:[#allocation5 + $0x308] sm:$0xff] }
  0xd3   : > { %723 = vmatmul.f32.gmra.mxu1 %v2531_v17  ;;  %1068 = vmatpush.xpose.msra.mxu3 %v462_v32  ;;  %v457_v32 = vld [vmem:[#allocation5 + $0x330] sm:$0xff] }
  0xd5   : > { %788 = vmatmul.f32.gmra.mxu2 %v2534_v18  ;;  %894 = vmatmul.f32.gmra.mxu0 %v2537_v19  ;;  %v2560_v19 = vld [vmem:[%s2309_s28 + $0x130] sm:$0xff]  ;;  %v463_v18 = vld [vmem:[#allocation5 + $0x360] sm:$0xff] }
  0xd6   : > { %3513 = vst [vmem:[#allocation32_spill] sm:$0xff] %v2560_v19  ;;  %1133 = vmatpush.xpose.msra.mxu0 %v463_v18  ;;  %v458_v18 = vld [vmem:[#allocation5 + $0x338] sm:$0xff]  ;;  %1191 = vmatpush.xpose.msra.mxu1 %v499_v39 }
  0xd7   : > { %1069 = vmatpush.xpose.msra.mxu3 %v457_v32  ;;  %v2588_v32 = vperm.slane %v595_v30, 0  ;;  %v494_v30 = vld [vmem:[#allocation5 + $0x458] sm:$0xff] }
  0xda   : > { %832 = vmatmul.f32.gmra.mxu3 %v2544_v38  ;;  %1134 = vmatpush.xpose.msra.mxu0 %v458_v18 }
  0xdb   : > { %726 = vmatmul.f32.gmra.mxu1 %v2547_v61  ;;  %1070 = vmatpush.xpose.msra.mxu3 %v452_v37 }
  0xdc   : > { %1192 = vmatpush.xpose.msra.mxu1 %v494_v30 }
  0xdd   : > { %791 = vmatmul.f32.gmra.mxu2 %v2550_v15  ;;  %897 = vmatmul.f32.gmra.mxu0 %v2553_v16  ;;  %v2578_v15 = vld [vmem:[%s2309_s28 + $0x158] sm:$0xff] }
  0xde   : > { %3517 = vst [vmem:[#allocation36_spill] sm:$0xff] %v2578_v15 }
  0xe2   : > { %835 = vmatmul.f32.gmra.mxu3 %v2560_v19 }
  0xe3   : > { %729 = vmatmul.f32.gmra.mxu1 %v2563_v56  ;;  %v479_v56 = vld [vmem:[#allocation5 + $0x3e0] sm:$0xff] }
  0xe5   : > { %794 = vmatmul.f32.gmra.mxu2 %v2566_v55  ;;  %900 = vmatmul.f32.gmra.mxu0 %v2569_v54  ;;  %v570_v54 = vld [vmem:[#allocation5 + $0x6b8] sm:$0xff] }
  0xe6   : > { %1257 = vmatpush.xpose.msra.mxu2 %v570_v54  ;;  %v447_v54 = vld [vmem:[#allocation5 + $0x2e0] sm:$0xff] }
  0xe7   : > { %v2575_v16 = vpop.f32.mrf.mxu0  ;;  %1071 = vmatpush.xpose.msra.mxu3 %v447_v54  ;;  %v442_v54 = vld [vmem:[#allocation5 + $0x2b8] sm:$0xff] }
  0xe8   : > { %v2580_v31 = vpop.f32.mrf.mxu1 }
  0xea   : > { %838 = vmatmul.f32.gmra.mxu3 %v2578_v15  ;;  %v489_v15 = vld [vmem:[#allocation5 + $0x430] sm:$0xff] }
  0xeb   : > { %944 = vmatmul.f32.vlgmr.msrb.gmra.mxu1 %v2320_v50  ;;  %v2599_v50 = vld [vmem:[%s2309_s28 + $0x180] sm:$0xff]  ;;  %1072 = vmatpush.xpose.msra.mxu3 %v442_v54  ;;  %v437_v54 = vld [vmem:[#allocation5 + $0x290] sm:$0xff] }
  0xec   : > { %3519 = vst [vmem:[#allocation38_spill] sm:$0xff] %v2599_v50  ;;  %1193 = vmatpush.xpose.msra.mxu1 %v489_v15 }
  0xed   : > { %1009 = vmatmul.f32.vlgmr.msrb.gmra.mxu2 %v2326_v52  ;;  %903 = vmatmul.f32.gmra.mxu0 %v2583_v5  ;;  %v644_v55 = vpop.f32.mrf.mxu3  ;;  %v453_v52 = vld [vmem:[#allocation5 + $0x310] sm:$0xff]  ;;  %v2604_v5 = vld [vmem:[%s2309_s28 + $0x188] sm:$0xff] }
  0xee   : > { %v2592_v18 = vadd.f32 %v644_v55, %v2588_v32  ;;  %1135 = vmatpush.xpose.msra.mxu0 %v453_v52  ;;  %3520 = vst [vmem:[#allocation39_spill] sm:$0xff] %v2604_v5  ;;  %v565_v55 = vld [vmem:[#allocation5 + $0x690] sm:$0xff] }
  0xef   : > { %v2596_v4 = vpop.f32.mrf.mxu0  ;;  %1258 = vmatpush.xpose.msra.mxu2 %v565_v55  ;;  %v560_v55 = vld [vmem:[#allocation5 + $0x668] sm:$0xff]  ;;  %1073 = vmatpush.xpose.msra.mxu3 %v437_v54  ;;  %v550_v54 = vld [vmem:[#allocation5 + $0x618] sm:$0xff] }
  0xf0   : > { %v2594_v39 = vpop.f32.mrf.mxu2  ;;  %v2601_v47 = vpop.f32.mrf.mxu1  ;;  %1194 = vmatpush.xpose.msra.mxu1 %v484_v28 }
  0xf2   : > { %841 = vmatmul.f32.gmra.mxu3 %v2599_v50  ;;  %v2618_v50 = vld [vmem:[%s2309_s28 + $0x1a8] sm:$0xff] }
  0xf3   : > { %947 = vmatmul.f32.gmra.mxu1 %v2336_v62  ;;  %3521 = vst [vmem:[#allocation40_spill] sm:$0xff] %v2618_v50  ;;  %v448_v62 = vld [vmem:[#allocation5 + $0x2e8] sm:$0xff]  ;;  %1259 = vmatpush.xpose.msra.mxu2 %v560_v55  ;;  %v555_v55 = vld [vmem:[#allocation5 + $0x640] sm:$0xff] }
  0xf4   : > { %1136 = vmatpush.xpose.msra.mxu0 %v448_v62  ;;  %1195 = vmatpush.xpose.msra.mxu1 %v479_v56 }
  0xf5   : > { %1012 = vmatmul.f32.gmra.mxu2 %v2342_v0  ;;  %906 = vmatmul.f32.gmra.mxu0 %v2604_v5  ;;  %v647_v37 = vpop.f32.mrf.mxu3  ;;  %v2623_v5 = vld [vmem:[%s2309_s28 + $0x1b0] sm:$0xff] }
  0xf6   : > { %v2611_v42 = vadd.f32 %v647_v37, %v2588_v32  ;;  %3522 = vst [vmem:[#allocation41_spill] sm:$0xff] %v2623_v5 }
  0xf7   : > { %v2615_v30 = vpop.f32.mrf.mxu0  ;;  %1260 = vmatpush.xpose.msra.mxu2 %v555_v55  ;;  %v591_v55 = vld [vmem:[#allocation5 + $0x760] sm:$0xff] }
  0xf8   : > { %v2613_v52 = vpop.f32.mrf.mxu2  ;;  %v2620_v0 = vpop.f32.mrf.mxu1  ;;  %1318 = vmatpush.xpose.msrb.mxu3 %v591_v55  ;;  %v586_v55 = vld [vmem:[#allocation5 + $0x738] sm:$0xff] }
  0xfa   : > { %844 = vmatmul.f32.gmra.mxu3 %v2618_v50  ;;  %v2637_v50 = vld [vmem:[%s2309_s28 + $0x1d0] sm:$0xff] }
  0xfb   : > { %950 = vmatmul.f32.gmra.mxu1 %v2352_v10  ;;  %3523 = vst [vmem:[#allocation42_spill] sm:$0xff] %v2637_v50  ;;  %v443_v10 = vld [vmem:[#allocation5 + $0x2c0] sm:$0xff]  ;;  %1261 = vmatpush.xpose.msra.mxu2 %v550_v54  ;;  %v545_v54 = vld [vmem:[#allocation5 + $0x5f0] sm:$0xff] }
  0xfc   : > { %1137 = vmatpush.xpose.msra.mxu0 %v443_v10  ;;  %1319 = vmatpush.xpose.msrb.mxu3 %v586_v55  ;;  %v581_v55 = vld [vmem:[#allocation5 + $0x710] sm:$0xff] }
  0xfd   : > { %1015 = vmatmul.f32.gmra.mxu2 %v2358_v12  ;;  %909 = vmatmul.f32.gmra.mxu0 %v2623_v5  ;;  %v650_v37 = vpop.f32.mrf.mxu3  ;;  %v2642_v5 = vld [vmem:[%s2309_s28 + $0x1d8] sm:$0xff] }
  0xfe   : > { %v2630_v29 = vadd.f32 %v650_v37, %v2588_v32  ;;  %3524 = vst [vmem:[#allocation43_spill] sm:$0xff] %v2642_v5 }
  0xff   : > { %v2634_v62 = vpop.f32.mrf.mxu0  ;;  %1262 = vmatpush.xpose.msra.mxu2 %v545_v54  ;;  %v540_v54 = vld [vmem:[#allocation5 + $0x5c8] sm:$0xff] }
 0x100   : > { %v2632_v15 = vpop.f32.mrf.mxu2  ;;  %v2639_v12 = vpop.f32.mrf.mxu1  ;;  %1320 = vmatpush.xpose.msrb.mxu3 %v581_v55  ;;  %v576_v55 = vld [vmem:[#allocation5 + $0x6e8] sm:$0xff] }
 0x102   : > { %847 = vmatmul.f32.gmra.mxu3 %v2637_v50  ;;  %v2656_v50 = vld [vmem:[%s2309_s28 + $0x1f8] sm:$0xff] }
 0x103   : > { %953 = vmatmul.f32.gmra.mxu1 %v2368_v22  ;;  %3525 = vst [vmem:[#allocation44_spill] sm:$0xff] %v2656_v50  ;;  %v438_v22 = vld [vmem:[#allocation5 + $0x298] sm:$0xff]  ;;  %1263 = vmatpush.xpose.msra.mxu2 %v540_v54  ;;  %v535_v54 = vld [vmem:[#allocation5 + $0x5a0] sm:$0xff] }
 0x104   : > { %1138 = vmatpush.xpose.msra.mxu0 %v438_v22  ;;  %1321 = vmatpush.xpose.msrb.mxu3 %v576_v55 }
 0x105   : > { %1018 = vmatmul.f32.gmra.mxu2 %v2374_v24  ;;  %912 = vmatmul.f32.gmra.mxu0 %v2642_v5  ;;  %v653_v37 = vpop.f32.mrf.mxu3  ;;  %v2661_v5 = vld [vmem:[%s2309_s28 + $0x200] sm:$0xff] }
 0x106   : > { %v2649_v19 = vadd.f32 %v653_v37, %v2588_v32  ;;  %3526 = vst [vmem:[#allocation45_spill] sm:$0xff] %v2661_v5 }
 0x107   : > { %v2653_v10 = vpop.f32.mrf.mxu0  ;;  %1264 = vmatpush.xpose.msra.mxu2 %v535_v54  ;;  %v624_v54 = vadd.f32 %v2596_v4, %v2588_v32 }
 0x108   : > { %v2651_v28 = vpop.f32.mrf.mxu2  ;;  %v2658_v24 = vpop.f32.mrf.mxu1 }
 0x10a   : > { %850 = vmatmul.f32.gmra.mxu3 %v2656_v50 }
 0x10b   : > { %956 = vmatmul.f32.gmra.mxu1 %v2384_v33  ;;  %v2680_v33 = vld [vmem:[%s2309_s28 + $0x228] sm:$0xff] }
 0x10c   : > { %3528 = vst [vmem:[#allocation47_spill] sm:$0xff] %v2680_v33 }
 0x10d   : > { %1021 = vmatmul.f32.gmra.mxu2 %v2390_v35  ;;  %915 = vmatmul.f32.gmra.mxu0 %v2661_v5  ;;  %v656_v37 = vpop.f32.mrf.mxu3  ;;  %v474_v35 = vld [vmem:[#allocation5 + $0x3b8] sm:$0xff]  ;;  %v592_v5 = vld [vmem:[#allocation5 + $0x768] sm:$0xff] }
 0x10e   : > { %v2668_v8 = vadd.f32 %v656_v37, %v2588_v32  ;;  %1196 = vmatpush.xpose.msra.mxu1 %v474_v35  ;;  %1383 = vmatpush.xpose.msrb.mxu0 %v592_v5  ;;  %v469_v35 = vld [vmem:[#allocation5 + $0x390] sm:$0xff]  ;;  %v587_v5 = vld [vmem:[#allocation5 + $0x740] sm:$0xff] }
 0x10f   : > { %v2672_v22 = vpop.f32.mrf.mxu0 }
 0x110   : > { %v2670_v56 = vpop.f32.mrf.mxu2  ;;  %v2677_v50 = vpop.f32.mrf.mxu1 }
 0x112   : > { %853 = vmatmul.f32.gmra.mxu3 %v2675_v14  ;;  %1197 = vmatpush.xpose.msra.mxu1 %v469_v35  ;;  %v464_v35 = vld [vmem:[#allocation5 + $0x368] sm:$0xff] }
 0x113   : > { %959 = vmatmul.f32.gmra.mxu1 %v2400_v43  ;;  %1384 = vmatpush.xpose.msrb.mxu0 %v587_v5  ;;  %v621_v5 = vadd.f32 %v2575_v16, %v2588_v32 }
 0x115   : > { %1024 = vmatmul.f32.gmra.mxu2 %v2406_v45  ;;  %918 = vmatmul.f32.gmra.mxu0 %v2680_v33  ;;  %v659_v37 = vpop.f32.mrf.mxu3  ;;  %v2699_v45 = vld [vmem:[%s2309_s28 + $0x250] sm:$0xff] }
 0x116   : > { %v2687_v38 = vadd.f32 %v659_v37, %v2588_v32  ;;  %3531 = vst [vmem:[#allocation50_spill] sm:$0xff] %v2699_v45  ;;  %1198 = vmatpush.xpose.msra.mxu1 %v464_v35  ;;  %v459_v35 = vld [vmem:[#allocation5 + $0x340] sm:$0xff] }
 0x117   : > { %v2691_v61 = vpop.f32.mrf.mxu0 }
 0x118   : > { %v2689_v14 = vpop.f32.mrf.mxu2  ;;  %v2696_v43 = vpop.f32.mrf.mxu1 }
 0x119   : > { %3530 = vst [vmem:[#allocation49_spill] sm:$0xff] %v2696_v43  ;;  %v2713_v43 = vld [vmem:[%s2309_s28 + $0x270] sm:$0xff] }
 0x11a   : > { %856 = vmatmul.f32.gmra.mxu3 %v2694_v58  ;;  %3533 = vst [vmem:[#allocation52_spill] sm:$0xff] %v2713_v43  ;;  %1199 = vmatpush.xpose.msra.mxu1 %v459_v35 }
 0x11b   : > { %962 = vmatmul.f32.gmra.mxu1 %v2416_v57 }
 0x11d   : > { %1027 = vmatmul.f32.gmra.mxu2 %v2422_v59  ;;  %921 = vmatmul.f32.gmra.mxu0 %v2699_v45  ;;  %v662_v37 = vpop.f32.mrf.mxu3  ;;  %v2718_v59 = vld [vmem:[%s2309_s28 + $0x278] sm:$0xff] }
 0x11e   : > { %v2706_v33 = vadd.f32 %v662_v37, %v2588_v32  ;;  %3535 = vst [vmem:[#allocation54_spill] sm:$0xff] %v2718_v59  ;;  %v582_v45 = vld [vmem:[#allocation5 + $0x718] sm:$0xff] }
 0x11f   : > { %v2710_v60 = vpop.f32.mrf.mxu0  ;;  %1385 = vmatpush.xpose.msrb.mxu0 %v582_v45 }
 0x120   : > { %v2708_v58 = vpop.f32.mrf.mxu2  ;;  %3532 = vst [vmem:[#allocation51_spill] sm:$0xff] %v2710_v60  ;;  %v2715_v57 = vpop.f32.mrf.mxu1  ;;  %v577_v60 = vld [vmem:[#allocation5 + $0x6f0] sm:$0xff] }
 0x121   : > { %3534 = vst [vmem:[#allocation53_spill] sm:$0xff] %v2715_v57 }
 0x122   : > { %859 = vmatmul.f32.gmra.mxu3 %v2713_v43 }
 0x123   : > { %965 = vmatmul.f32.gmra.mxu1 %v2432_v7  ;;  %v686_v7 = vadd.f32 %v2580_v31, %v621_v5  ;;  %v530_v31 = vld [vmem:[#allocation5 + $0x578] sm:$0xff]  ;;  %1386 = vmatpush.xpose.msrb.mxu0 %v577_v60 }
 0x124   : > { %1265 = vmatpush.xpose.msra.mxu2 %v530_v31  ;;  %v454_v60 = vld [vmem:[#allocation5 + $0x318] sm:$0xff] }
 0x125   : > { %1030 = vmatmul.f32.gmra.mxu2 %v2438_v9  ;;  %924 = vmatmul.f32.gmra.mxu0 %v2718_v59  ;;  %v665_v37 = vpop.f32.mrf.mxu3  ;;  %v751_v45 = vadd.f32 %v2594_v39, %v686_v7  ;;  %v566_v7 = vld [vmem:[#allocation5 + $0x698] sm:$0xff] }
 0x126   : > { %v2727_v43 = vadd.f32 %v665_v37, %v2588_v32  ;;  %1200 = vmatpush.xpose.msra.mxu1 %v454_v60 }
 0x128   : > { %v2729_v57 = vpop.f32.mrf.mxu2  ;;  %v709_v9 = vpop.f32.mrf.mxu1 }
 0x129   : > { %v2733_v16 = vadd.f32 %v709_v9, %v2592_v18  ;;  %v571_v18 = vld [vmem:[#allocation5 + $0x6c0] sm:$0xff] }
 0x12a   : > { %v880_v59 = vpop.f32.mrf.mxu0  ;;  %1074 = vmatmul.f32.vlgmr.msra.gmra.mxu3 %v2329_v53 }
 0x12b   : > { %968 = vmatmul.f32.gmra.mxu1 %v2323_v51  ;;  %1322 = vmatpush.xpose.msrb.mxu3 %v571_v18  ;;  %v689_v51 = vadd.f32 %v2601_v47, %v624_v54  ;;  %v567_v54 = vld [vmem:[#allocation5 + $0x6a0] sm:$0xff]  ;;  %v561_v18 = vld [vmem:[#allocation5 + $0x670] sm:$0xff] }
 0x12d   : > { %1033 = vmatmul.f32.gmra.mxu2 %v2451_v27  ;;  %1139 = vmatmul.f32.vlgmr.msra.gmra.mxu0 %v2448_v26  ;;  %v815_v5 = vpop.f32.mrf.mxu3  ;;  %v572_v26 = vld [vmem:[#allocation5 + $0x6c8] sm:$0xff]  ;;  %v754_v47 = vadd.f32 %v2613_v52, %v689_v51 }
 0x12e   : > { %v816_v55 = vadd.f32 %v815_v5, %v751_v45  ;;  %1387 = vmatpush.xpose.msrb.mxu0 %v572_v26 }
 0x12f   : > { %1323 = vmatpush.xpose.msrb.mxu3 %v566_v7  ;;  %v2801_v7 = vld [vmem:[#allocation5 + $0x778] sm:$0xff] }
 0x130   : > { %v2743_v53 = vpop.f32.mrf.mxu2  ;;  %v881_v27 = vadd.f32 %v880_v59, %v816_v55  ;;  %v712_v37 = vpop.f32.mrf.mxu1  ;;  %v627_v59 = vadd.f32 %v2615_v30, %v2588_v32 }
 0x131   : > { %v2747_v39 = vadd.f32 %v712_v37, %v2611_v42  ;;  %v525_v42 = vld [vmem:[#allocation5 + $0x550] sm:$0xff] }
 0x132   : > { %v883_v4 = vpop.f32.mrf.mxu0  ;;  %1578 = vst [vmem:[%s2749_s22] sm:$0xff] %v881_v27  ;;  %1077 = vmatmul.f32.gmra.mxu3 %v2345_v1  ;;  %1266 = vmatpush.xpose.msra.mxu2 %v525_v42  ;;  %v562_v27 = vld [vmem:[#allocation5 + $0x678] sm:$0xff] }
 0x133   : > { %971 = vmatmul.f32.gmra.mxu1 %v2339_v63  ;;  %v692_v63 = vadd.f32 %v2620_v0, %v627_v59  ;;  %v630_v0 = vadd.f32 %v2634_v62, %v2588_v32  ;;  %1388 = vmatpush.xpose.msrb.mxu0 %v567_v54  ;;  %v557_v59 = vld [vmem:[#allocation5 + $0x650] sm:$0xff] }
 0x134   : > { %1324 = vmatpush.xpose.msrb.mxu3 %v561_v18  ;;  %v2832_v18 = vld [vmem:[#allocation5 + $0x748] sm:$0xff] }
 0x135   : > { %1036 = vmatmul.f32.gmra.mxu2 %v2467_v41  ;;  %1142 = vmatmul.f32.gmra.mxu0 %v2464_v40  ;;  %v818_v9 = vpop.f32.mrf.mxu3  ;;  %v449_v40 = vld [vmem:[#allocation5 + $0x2f0] sm:$0xff]  ;;  %v757_v31 = vadd.f32 %v2632_v15, %v692_v63 }
 0x136   : > { %v819_v35 = vadd.f32 %v818_v9, %v754_v47  ;;  %1201 = vmatpush.xpose.msra.mxu1 %v449_v40  ;;  %v439_v47 = vld [vmem:[#allocation5 + $0x2a0] sm:$0xff] }
 0x137   : > { %1389 = vmatpush.xpose.msrb.mxu0 %v562_v27 }
 0x138   : > { %v2759_v1 = vpop.f32.mrf.mxu2  ;;  %v884_v41 = vadd.f32 %v883_v4, %v819_v35  ;;  %v715_v52 = vpop.f32.mrf.mxu1  ;;  %v556_v4 = vld [vmem:[#allocation5 + $0x648] sm:$0xff] }
 0x139   : > { %v2763_v45 = vadd.f32 %v715_v52, %v2630_v29  ;;  %v520_v29 = vld [vmem:[#allocation5 + $0x528] sm:$0xff]  ;;  %1325 = vmatpush.xpose.msrb.mxu3 %v556_v4 }
 0x13a   : > { %v886_v30 = vpop.f32.mrf.mxu0  ;;  %1581 = vst [vmem:[%s2749_s22 + $0x18] sm:$0xff] %v884_v41  ;;  %1080 = vmatmul.f32.gmra.mxu3 %v2361_v13  ;;  %1267 = vmatpush.xpose.msra.mxu2 %v520_v29  ;;  %v2812_v41 = vld [vmem:[#allocation5 + $0x770] sm:$0xff]  ;;  %v547_v29 = vld [vmem:[#allocation5 + $0x600] sm:$0xff] }
 0x13b   : > { %974 = vmatmul.f32.gmra.mxu1 %v2355_v11  ;;  %v695_v11 = vadd.f32 %v2639_v12, %v630_v0  ;;  %v633_v12 = vadd.f32 %v2653_v10, %v2588_v32  ;;  %1390 = vmatpush.xpose.msrb.mxu0 %v557_v59  ;;  %v3537_v0 = vld [vmem:[#allocation13_spill] sm:$0xff] }
 0x13d   : > { %1039 = vmatmul.f32.gmra.mxu2 %v2483_v3  ;;  %1145 = vmatmul.f32.gmra.mxu0 %v2480_v2  ;;  %v821_v5 = vpop.f32.mrf.mxu3  ;;  %v444_v2 = vld [vmem:[#allocation5 + $0x2c8] sm:$0xff]  ;;  %v760_v37 = vadd.f32 %v2651_v28, %v695_v11 }
 0x13e   : > { %v822_v55 = vadd.f32 %v821_v5, %v757_v31  ;;  %1202 = vmatpush.xpose.msra.mxu1 %v444_v2  ;;  %v3538_v5 = vld [vmem:[#allocation12_spill] sm:$0xff] }
 0x13f   : > { %v2841_v2 = vld [vmem:[#allocation5 + $0x728] sm:$0xff] }
 0x140   : > { %v2773_v13 = vpop.f32.mrf.mxu2  ;;  %v887_v3 = vadd.f32 %v886_v30, %v822_v55  ;;  %v718_v15 = vpop.f32.mrf.mxu1  ;;  %v2821_v30 = vld [vmem:[#allocation5 + $0x750] sm:$0xff] }
 0x141   : > { %v2777_v51 = vadd.f32 %v718_v15, %v2649_v19  ;;  %v515_v19 = vld [vmem:[#allocation5 + $0x500] sm:$0xff]  ;;  %v3539_v55 = vld [vmem:[#allocation29_spill] sm:$0xff] }
 0x142   : > { %v889_v62 = vpop.f32.mrf.mxu0  ;;  %1584 = vst [vmem:[%s2749_s22 + $0x30] sm:$0xff] %v887_v3  ;;  %1083 = vmatmul.f32.gmra.mxu3 %v2377_v25  ;;  %1268 = vmatpush.xpose.msra.mxu2 %v515_v19  ;;  %v3540_v3 = vld [vmem:[#allocation51_spill] sm:$0xff] }
 0x143   : > { %977 = vmatmul.f32.gmra.mxu1 %v2371_v23  ;;  %v698_v23 = vadd.f32 %v2658_v24, %v633_v12  ;;  %v636_v24 = vadd.f32 %v2672_v22, %v2588_v32  ;;  %v642_v15 = vadd.f32 %v3540_v3, %v2588_v32  ;;  %v778_v3 = vadd.f32 %v2759_v1, %v2747_v39  ;;  %v3553_v1 = vld [vmem:[#allocation20_spill] sm:$0xff] }
 0x144   : > { %1203 = vmatpush.xpose.msra.mxu1 %v439_v47  ;;  %v3544_v47 = vld [vmem:[#allocation14_spill] sm:$0xff] }
 0x145   : > { %1042 = vmatmul.f32.gmra.mxu2 %v2499_v21  ;;  %1148 = vmatmul.f32.gmra.mxu0 %v2496_v20  ;;  %v824_v60 = vpop.f32.mrf.mxu3  ;;  %v763_v42 = vadd.f32 %v2670_v56, %v698_v23  ;;  %v3543_v23 = vld [vmem:[#allocation15_spill] sm:$0xff] }
 0x146   : > { %v825_v26 = vadd.f32 %v824_v60, %v760_v37  ;;  %1513 = vmatpush.xpose.msrb.mxu2 %v2801_v7 }
 0x148   : > { %v2787_v25 = vpop.f32.mrf.mxu2  ;;  %v890_v21 = vadd.f32 %v889_v62, %v825_v26  ;;  %v721_v28 = vpop.f32.mrf.mxu1  ;;  %1794 = vmatpush.xpose.msrb.mxu1 %v2812_v41  ;;  %v3541_v62 = vld [vmem:[#allocation28_spill] sm:$0xff] }
 0x149   : > { %v2791_v10 = vadd.f32 %v721_v28, %v2668_v8  ;;  %v551_v8 = vld [vmem:[#allocation5 + $0x620] sm:$0xff] }
 0x14a   : > { %v892_v20 = vpop.f32.mrf.mxu0  ;;  %1587 = vst [vmem:[%s2749_s22 + $0x48] sm:$0xff] %v890_v21  ;;  %1086 = vmatmul.f32.gmra.mxu3 %v2393_v36  ;;  %1514 = vmatpush.xpose.msrb.mxu2 %v2821_v30  ;;  %v542_v21 = vld [vmem:[#allocation5 + $0x5d8] sm:$0xff]  ;;  %v2852_v28 = vld [vmem:[#allocation5 + $0x720] sm:$0xff] }
 0x14b   : > { %980 = vmatmul.f32.gmra.mxu1 %v2387_v34  ;;  %1326 = vmatpush.xpose.msrb.mxu3 %v551_v8  ;;  %v701_v34 = vadd.f32 %v2677_v50, %v636_v24  ;;  %v639_v50 = vadd.f32 %v2691_v61, %v2588_v32  ;;  %v2859_v24 = vld [vmem:[#allocation5 + $0x700] sm:$0xff] }
 0x14c   : > { %1795 = vmatpush.xpose.msrb.mxu1 %v2832_v18 }
 0x14d   : > { %1045 = vmatmul.f32.gmra.mxu2 %v2515_v49  ;;  %1151 = vmatmul.f32.gmra.mxu0 %v2512_v48  ;;  %v827_v9 = vpop.f32.mrf.mxu3  ;;  %v552_v48 = vld [vmem:[#allocation5 + $0x628] sm:$0xff]  ;;  %v766_v52 = vadd.f32 %v2689_v14, %v701_v34 }
 0x14e   : > { %v828_v35 = vadd.f32 %v827_v9, %v763_v42  ;;  %1391 = vmatpush.xpose.msrb.mxu0 %v552_v48  ;;  %v3536_v14 = vld [vmem:[#allocation49_spill] sm:$0xff]  ;;  %1515 = vmatpush.xpose.msrb.mxu2 %v2841_v2  ;;  %v3546_v42 = vld [vmem:[#allocation32_spill] sm:$0xff]  ;;  %v2868_v48 = vld [vmem:[#allocation5 + $0x6f8] sm:$0xff] }
 0x150   : > { %v2803_v36 = vpop.f32.mrf.mxu2  ;;  %v893_v49 = vadd.f32 %v892_v20, %v828_v35  ;;  %v724_v56 = vpop.f32.mrf.mxu1  ;;  %v3545_v20 = vld [vmem:[#allocation33_spill] sm:$0xff]  ;;  %1796 = vmatpush.xpose.msrb.mxu1 %v2852_v28 }
 0x151   : > { %v2808_v63 = vadd.f32 %v724_v56, %v2687_v38  ;;  %v546_v38 = vld [vmem:[#allocation5 + $0x5f8] sm:$0xff]  ;;  %v3547_v56 = vld [vmem:[#allocation16_spill] sm:$0xff] }
 0x152   : > { %v895_v22 = vpop.f32.mrf.mxu0  ;;  %1590 = vst [vmem:[%s2749_s22 + $0x60] sm:$0xff] %v893_v49  ;;  %1089 = vmatmul.f32.gmra.mxu3 %v2409_v46  ;;  %1392 = vmatpush.xpose.msrb.mxu0 %v547_v29  ;;  %v532_v29 = vld [vmem:[#allocation5 + $0x588] sm:$0xff] }
 0x153   : > { %983 = vmatmul.f32.gmra.mxu1 %v2403_v44  ;;  %1327 = vmatpush.xpose.msrb.mxu3 %v546_v38  ;;  %v775_v38 = vadd.f32 %v2743_v53, %v2733_v16  ;;  %v3550_v53 = vld [vmem:[#allocation18_spill] sm:$0xff] }
 0x154   : > { %1516 = vmatpush.xpose.msrb.mxu2 %v2859_v24  ;;  %1797 = vmatpush.xpose.msrb.mxu1 %v2868_v48 }
 0x155   : > { %1048 = vmatmul.f32.gmra.mxu2 %v2531_v17  ;;  %1154 = vmatmul.f32.gmra.mxu0 %v2528_v6  ;;  %v830_v46 = vpop.f32.mrf.mxu3  ;;  %v704_v17 = vadd.f32 %v3536_v14, %v639_v50  ;;  %v1918_v50 = vld [vmem:[%s2309_s28] sm:$0xff]  ;;  %v2876_v14 = vld [vmem:[#allocation5 + $0x6d8] sm:$0xff] }
 0x156   : > { %v831_v44 = vadd.f32 %v830_v46, %v766_v52  ;;  %1393 = vmatpush.xpose.msrb.mxu0 %v542_v21  ;;  %v3548_v52 = vld [vmem:[#allocation17_spill] sm:$0xff]  ;;  %v3549_v46 = vld [vmem:[#allocation36_spill] sm:$0xff] }
 0x157   : > { %v769_v11 = vadd.f32 %v2708_v58, %v704_v17  ;;  %v3542_v58 = vld [vmem:[#allocation53_spill] sm:$0xff] }
 0x158   : > { %v2823_v40 = vpop.f32.mrf.mxu2  ;;  %v896_v54 = vadd.f32 %v895_v22, %v831_v44  ;;  %v727_v61 = vpop.f32.mrf.mxu1  ;;  %v707_v19 = vadd.f32 %v3542_v58, %v642_v15  ;;  %v537_v22 = vld [vmem:[#allocation5 + $0x5b0] sm:$0xff]  ;;  %v531_v44 = vld [vmem:[#allocation5 + $0x580] sm:$0xff]  ;;  %1517 = vmatpush.xpose.msrb.mxu2 %v2876_v14 }
 0x159   : > { %v2828_v31 = vadd.f32 %v727_v61, %v2706_v33  ;;  %v541_v33 = vld [vmem:[#allocation5 + $0x5d0] sm:$0xff] }
 0x15a   : > { %v898_v6 = vpop.f32.mrf.mxu0  ;;  %1593 = vst [vmem:[%s2749_s22 + $0x78] sm:$0xff] %v896_v54  ;;  %1092 = vmatmul.f32.gmra.mxu3 %v3537_v0  ;;  %v772_v59 = vadd.f32 %v2729_v57, %v707_v19  ;;  %1394 = vmatpush.xpose.msrb.mxu0 %v537_v22  ;;  %v3552_v15 = vld [vmem:[#allocation38_spill] sm:$0xff]  ;;  %v2919_v22 = vld [vmem:[#allocation5 + $0x680] sm:$0xff] }
 0x15b   : > { %986 = vmatmul.f32.gmra.mxu1 %v3538_v5  ;;  %1328 = vmatpush.xpose.msrb.mxu3 %v541_v33  ;;  %v2885_v5 = vld [vmem:[#allocation5 + $0x6d0] sm:$0xff] }
 0x15c   : > { %1798 = vmatpush.xpose.msrb.mxu1 %v2885_v5  ;;  %v2893_v33 = vld [vmem:[#allocation5 + $0x6b0] sm:$0xff] }
 0x15d   : > { %1051 = vmatmul.f32.gmra.mxu2 %v3539_v55  ;;  %1157 = vmatmul.f32.gmra.mxu0 %v3541_v62  ;;  %v833_v27 = vpop.f32.mrf.mxu3  ;;  %v3551_v55 = vld [vmem:[#allocation19_spill] sm:$0xff]  ;;  %v1920_v21 = vld [vmem:[%s2309_s28 + $0x50] sm:$0xff] }
 0x15e   : > { %v834_v12 = vadd.f32 %v833_v27, %v769_v11  ;;  %v1919_v11 = vld [vmem:[%s2309_s28 + $0x28] sm:$0xff]  ;;  %v526_v62 = vld [vmem:[#allocation5 + $0x558] sm:$0xff]  ;;  %1395 = vmatpush.xpose.msrb.mxu0 %v532_v29  ;;  %1518 = vmatpush.xpose.msrb.mxu2 %v2893_v33 }
 0x160   : > { %v2843_v37 = vpop.f32.mrf.mxu2  ;;  %v899_v4 = vadd.f32 %v898_v6, %v834_v12  ;;  %v730_v32 = vpop.f32.mrf.mxu1 }
 0x161   : > { %v2848_v60 = vadd.f32 %v730_v32, %v2727_v43  ;;  %v536_v43 = vld [vmem:[#allocation5 + $0x5a8] sm:$0xff]  ;;  %v527_v32 = vld [vmem:[#allocation5 + $0x560] sm:$0xff] }
 0x162   : > { %v901_v26 = vpop.f32.mrf.mxu0  ;;  %1596 = vst [vmem:[%s2749_s22 + $0x90] sm:$0xff] %v899_v4  ;;  %1095 = vmatmul.f32.gmra.mxu3 %v3543_v23  ;;  %v3554_v23 = vld [vmem:[#allocation21_spill] sm:$0xff]  ;;  %1396 = vmatpush.xpose.msrb.mxu0 %v527_v32  ;;  %v3562_v32 = vld [vmem:[#allocation26_spill] sm:$0xff] }
 0x163   : > { %989 = vmatmul.f32.gmra.mxu1 %v3544_v47  ;;  %1329 = vmatpush.xpose.msrb.mxu3 %v536_v43  ;;  %v781_v47 = vadd.f32 %v2773_v13, %v2763_v45  ;;  %v3556_v13 = vld [vmem:[#allocation22_spill] sm:$0xff] }
 0x165   : > { %1054 = vmatmul.f32.gmra.mxu2 %v3545_v20  ;;  %1160 = vmatmul.f32.gmra.mxu0 %v3546_v42  ;;  %v836_v8 = vpop.f32.mrf.mxu3  ;;  %v3555_v20 = vld [vmem:[#allocation40_spill] sm:$0xff] }
 0x166   : > { %v837_v35 = vadd.f32 %v836_v8, %v772_v59  ;;  %v521_v59 = vld [vmem:[#allocation5 + $0x530] sm:$0xff]  ;;  %v2910_v42 = vld [vmem:[#allocation5 + $0x688] sm:$0xff] }
 0x167   : > { %1330 = vmatpush.xpose.msrb.mxu3 %v531_v44  ;;  %1519 = vmatpush.xpose.msrb.mxu2 %v2910_v42  ;;  %v516_v44 = vld [vmem:[#allocation5 + $0x508] sm:$0xff] }
 0x168   : > { %v2861_v9 = vpop.f32.mrf.mxu2  ;;  %v902_v34 = vadd.f32 %v901_v26, %v837_v35  ;;  %v2864_v49 = vpop.f32.mrf.mxu1  ;;  %v2902_v26 = vld [vmem:[#allocation5 + $0x6a8] sm:$0xff] }
 0x169   : > { %1799 = vmatpush.xpose.msrb.mxu1 %v2902_v26 }
 0x16a   : > { %v904_v57 = vpop.f32.mrf.mxu0  ;;  %1599 = vst [vmem:[%s2749_s22 + $0xa8] sm:$0xff] %v902_v34  ;;  %1098 = vmatmul.f32.gmra.mxu3 %v3547_v56  ;;  %v522_v56 = vld [vmem:[#allocation5 + $0x538] sm:$0xff] }
 0x16b   : > { %1204 = vmatmul.f32.vlgmr.msra.gmra.mxu1 %v3548_v52  ;;  %1331 = vmatpush.xpose.msrb.mxu3 %v526_v62  ;;  %v3557_v52 = vld [vmem:[#allocation23_spill] sm:$0xff]  ;;  %v3561_v62 = vld [vmem:[#allocation44_spill] sm:$0xff] }
 0x16c   : > { %1397 = vmatpush.xpose.msrb.mxu0 %v522_v56 }
 0x16d   : > { %1269 = vmatmul.f32.vlgmr.msra.gmra.mxu2 %v1918_v50  ;;  %1163 = vmatmul.f32.gmra.mxu0 %v3549_v46  ;;  %v839_v17 = vpop.f32.mrf.mxu3  ;;  %v1921_v50 = vld [vmem:[%s2309_s28 + $0x78] sm:$0xff] }
 0x16e   : > { %v840_v54 = vadd.f32 %v839_v17, %v775_v38  ;;  %v784_v38 = vadd.f32 %v2787_v25, %v2777_v51  ;;  %v3558_v46 = vld [vmem:[#allocation42_spill] sm:$0xff]  ;;  %1800 = vmatpush.xpose.msrb.mxu1 %v2919_v22  ;;  %v2927_v17 = vld [vmem:[#allocation5 + $0x660] sm:$0xff] }
 0x16f   : > { %1332 = vmatpush.xpose.msrb.mxu3 %v521_v59  ;;  %1520 = vmatpush.xpose.msrb.mxu2 %v2927_v17  ;;  %v548_v59 = vld [vmem:[#allocation5 + $0x608] sm:$0xff] }
 0x170   : > { %v2878_v61 = vpop.f32.mrf.mxu2  ;;  %v905_v6 = vadd.f32 %v904_v57, %v840_v54  ;;  %v2881_v0 = vpop.f32.mrf.mxu1 }
 0x172   : > { %v907_v16 = vpop.f32.mrf.mxu0  ;;  %1602 = vst [vmem:[%s2749_s22 + $0xc0] sm:$0xff] %v905_v6  ;;  %1101 = vmatmul.f32.gmra.mxu3 %v3550_v53  ;;  %v517_v53 = vld [vmem:[#allocation5 + $0x510] sm:$0xff] }
 0x173   : > { %1207 = vmatmul.f32.gmra.mxu1 %v3551_v55  ;;  %1333 = vmatpush.xpose.msrb.mxu3 %v516_v44  ;;  %v3559_v55 = vld [vmem:[#allocation24_spill] sm:$0xff] }
 0x174   : > { %1398 = vmatpush.xpose.msrb.mxu0 %v517_v53  ;;  %v3570_v44 = vld [vmem:[#allocation52_spill] sm:$0xff] }
 0x175   : > { %1272 = vmatmul.f32.gmra.mxu2 %v1919_v11  ;;  %1166 = vmatmul.f32.gmra.mxu0 %v3552_v15  ;;  %v842_v27 = vpop.f32.mrf.mxu3  ;;  %v2937_v11 = vld [vmem:[#allocation5 + $0x658] sm:$0xff]  ;;  %v1922_v15 = vld [vmem:[%s2309_s28 + $0xa0] sm:$0xff] }
 0x176   : > { %v843_v12 = vadd.f32 %v842_v27, %v778_v3  ;;  %v3560_v3 = vld [vmem:[#allocation25_spill] sm:$0xff]  ;;  %1801 = vmatpush.xpose.msrb.mxu1 %v2937_v11  ;;  %v2946_v27 = vld [vmem:[#allocation5 + $0x638] sm:$0xff] }
 0x177   : > { %1810 = vmatpush.xpose.msra.mxu3 %v2801_v7  ;;  %v787_v7 = vadd.f32 %v2803_v36, %v2791_v10  ;;  %1521 = vmatpush.xpose.msrb.mxu2 %v2946_v27 }
 0x178   : > { %v2895_v58 = vpop.f32.mrf.mxu2  ;;  %v908_v19 = vadd.f32 %v907_v16, %v843_v12  ;;  %v2898_v4 = vpop.f32.mrf.mxu1  ;;  %1448 = vmatpush.xpose.msra.mxu0 %v2812_v41 }
 0x17a   : > { %v910_v39 = vpop.f32.mrf.mxu0  ;;  %1605 = vst [vmem:[%s2749_s22 + $0xd8] sm:$0xff] %v908_v19  ;;  %1104 = vmatmul.f32.gmra.mxu3 %v3553_v1 }
 0x17b   : > { %1210 = vmatmul.f32.gmra.mxu1 %v3554_v23  ;;  %1811 = vmatpush.xpose.msra.mxu3 %v2821_v30  ;;  %v3563_v30 = vld [vmem:[#allocation27_spill] sm:$0xff]  ;;  %v1923_v23 = vld [vmem:[%s2309_s28 + $0xc8] sm:$0xff] }
 0x17c   : > { %1449 = vmatpush.xpose.msra.mxu0 %v2832_v18  ;;  %v790_v18 = vadd.f32 %v2823_v40, %v2808_v63  ;;  %v3565_v40 = vld [vmem:[#allocation30_spill] sm:$0xff] }
 0x17d   : > { %1275 = vmatmul.f32.gmra.mxu2 %v1920_v21  ;;  %1169 = vmatmul.f32.gmra.mxu0 %v3555_v20  ;;  %v845_v43 = vpop.f32.mrf.mxu3  ;;  %v3564_v21 = vld [vmem:[#allocation46_spill] sm:$0xff] }
 0x17e   : > { %v846_v8 = vadd.f32 %v845_v43, %v781_v47  ;;  %v2967_v47 = vld [vmem:[#allocation5 + $0x610] sm:$0xff] }
 0x17f   : > { %1812 = vmatpush.xpose.msra.mxu3 %v2841_v2  ;;  %1522 = vmatpush.xpose.msrb.mxu2 %v2967_v47 }
 0x180   : > { %v2912_v35 = vpop.f32.mrf.mxu2  ;;  %v911_v34 = vadd.f32 %v910_v39, %v846_v8  ;;  %v2915_v57 = vpop.f32.mrf.mxu1  ;;  %v2953_v39 = vld [vmem:[#allocation5 + $0x630] sm:$0xff]  ;;  %1450 = vmatpush.xpose.msra.mxu0 %v2852_v28 }
 0x181   : > { %1802 = vmatpush.xpose.msrb.mxu1 %v2953_v39 }
 0x182   : > { %v913_v45 = vpop.f32.mrf.mxu0  ;;  %1608 = vst [vmem:[%s2749_s22 + $0xf0] sm:$0xff] %v911_v34  ;;  %1107 = vmatmul.f32.gmra.mxu3 %v3556_v13  ;;  %v3566_v34 = vld [vmem:[#allocation31_spill] sm:$0xff]  ;;  %v544_v13 = vld [vmem:[#allocation5 + $0x5e8] sm:$0xff] }
 0x183   : > { %1213 = vmatmul.f32.gmra.mxu1 %v3557_v52  ;;  %1813 = vmatpush.xpose.msra.mxu3 %v2859_v24  ;;  %v1924_v24 = vld [vmem:[%s2309_s28 + $0xf0] sm:$0xff] }
 0x184   : > { %1451 = vmatpush.xpose.msra.mxu0 %v2868_v48  ;;  %v793_v48 = vadd.f32 %v2843_v37, %v2828_v31  ;;  %1523 = vmatpush.xpose.msrb.mxu2 %v544_v13  ;;  %v3568_v31 = vld [vmem:[#allocation34_spill] sm:$0xff]  ;;  %v3569_v37 = vld [vmem:[#allocation35_spill] sm:$0xff] }
 0x185   : > { %1278 = vmatmul.f32.gmra.mxu2 %v1921_v50  ;;  %1172 = vmatmul.f32.gmra.mxu0 %v3558_v46  ;;  %v848_v54 = vpop.f32.mrf.mxu3 }
 0x186   : > { %v849_v6 = vadd.f32 %v848_v54, %v784_v38  ;;  %1803 = vmatpush.xpose.msrb.mxu1 %v548_v59  ;;  %v539_v54 = vld [vmem:[#allocation5 + $0x5c0] sm:$0xff] }
 0x187   : > { %1814 = vmatpush.xpose.msra.mxu3 %v2876_v14 }
 0x188   : > { %v2929_v16 = vpop.f32.mrf.mxu2  ;;  %v914_v51 = vadd.f32 %v913_v45, %v849_v6  ;;  %v2933_v25 = vpop.f32.mrf.mxu1  ;;  %1452 = vmatpush.xpose.msra.mxu0 %v2885_v5  ;;  %v3567_v45 = vld [vmem:[#allocation48_spill] sm:$0xff]  ;;  %1524 = vmatpush.xpose.msrb.mxu2 %v539_v54 }
 0x189   : > { %v543_v5 = vld [vmem:[#allocation5 + $0x5e0] sm:$0xff] }
 0x18a   : > { %v916_v29 = vpop.f32.mrf.mxu0  ;;  %1611 = vst [vmem:[%s2749_s22 + $0x108] sm:$0xff] %v914_v51  ;;  %1110 = vmatmul.f32.gmra.mxu3 %v3559_v55  ;;  %1804 = vmatpush.xpose.msrb.mxu1 %v543_v5  ;;  %v538_v51 = vld [vmem:[#allocation5 + $0x5b8] sm:$0xff]  ;;  %v1927_v55 = vld [vmem:[%s2309_s28 + $0x140] sm:$0xff] }
 0x18b   : > { %1216 = vmatmul.f32.gmra.mxu1 %v3560_v3  ;;  %1815 = vmatpush.xpose.msra.mxu3 %v2893_v33  ;;  %v1925_v33 = vld [vmem:[%s2309_s28 + $0x118] sm:$0xff] }
 0x18c   : > { %1453 = vmatpush.xpose.msra.mxu0 %v2902_v26  ;;  %v796_v26 = vadd.f32 %v2861_v9, %v2848_v60  ;;  %v1926_v9 = vld [vmem:[%s2309_s28 + $0x8] sm:$0xff]  ;;  %v534_v3 = vld [vmem:[#allocation5 + $0x598] sm:$0xff] }
 0x18d   : > { %1281 = vmatmul.f32.gmra.mxu2 %v1922_v15  ;;  %1175 = vmatmul.f32.gmra.mxu0 %v3561_v62  ;;  %v851_v12 = vpop.f32.mrf.mxu3  ;;  %v533_v62 = vld [vmem:[#allocation5 + $0x590] sm:$0xff] }
 0x18e   : > { %v852_v41 = vadd.f32 %v851_v12, %v787_v7  ;;  %1805 = vmatpush.xpose.msrb.mxu1 %v538_v51  ;;  %1525 = vmatpush.xpose.msrb.mxu2 %v534_v3 }
 0x18f   : > { %1816 = vmatpush.xpose.msra.mxu3 %v2910_v42 }
 0x190   : > { %v2950_v19 = vpop.f32.mrf.mxu2  ;;  %v917_v10 = vadd.f32 %v916_v29, %v852_v41  ;;  %v2955_v36 = vpop.f32.mrf.mxu1  ;;  %1454 = vmatpush.xpose.msra.mxu0 %v2919_v22  ;;  %v1929_v41 = vld [vmem:[%s2309_s28 + $0x30] sm:$0xff] }
 0x192   : > { %v919_v1 = vpop.f32.mrf.mxu0  ;;  %1614 = vst [vmem:[%s2749_s22 + $0x120] sm:$0xff] %v917_v10  ;;  %1113 = vmatmul.f32.gmra.mxu3 %v3562_v32  ;;  %1806 = vmatpush.xpose.msrb.mxu1 %v533_v62  ;;  %v1930_v10 = vld [vmem:[%s2309_s28 + $0x168] sm:$0xff]  ;;  %v529_v32 = vld [vmem:[#allocation5 + $0x570] sm:$0xff] }
 0x193   : > { %1219 = vmatmul.f32.gmra.mxu1 %v3563_v30  ;;  %1817 = vmatpush.xpose.msra.mxu3 %v2927_v17  ;;  %v3571_v17 = vld [vmem:[#allocation37_spill] sm:$0xff] }
 0x194   : > { %1455 = vmatpush.xpose.msra.mxu0 %v2937_v11  ;;  %v1928_v11 = vld [vmem:[%s2309_s28 + $0x10] sm:$0xff]  ;;  %1526 = vmatpush.xpose.msrb.mxu2 %v529_v32 }
 0x195   : > { %1284 = vmatmul.f32.gmra.mxu2 %v1923_v23  ;;  %1178 = vmatmul.f32.gmra.mxu0 %v3564_v21  ;;  %v854_v20 = vpop.f32.mrf.mxu3 }
 0x196   : > { %v855_v2 = vadd.f32 %v854_v20, %v790_v18  ;;  %v528_v18 = vld [vmem:[#allocation5 + $0x568] sm:$0xff]  ;;  %v1932_v20 = vld [vmem:[%s2309_s28 + $0x58] sm:$0xff] }
 0x197   : > { %1818 = vmatpush.xpose.msra.mxu3 %v2946_v27  ;;  %1807 = vmatpush.xpose.msrb.mxu1 %v528_v18 }
 0x198   : > { %v2971_v28 = vpop.f32.mrf.mxu2  ;;  %v920_v43 = vadd.f32 %v919_v1, %v855_v2  ;;  %v2974_v8 = vpop.f32.mrf.mxu1  ;;  %1456 = vmatpush.xpose.msra.mxu0 %v2953_v39  ;;  %v3572_v39 = vld [vmem:[#allocation39_spill] sm:$0xff]  ;;  %v3573_v2 = vld [vmem:[#allocation41_spill] sm:$0xff] }
 0x199   : > { %v1931_v1 = vld [vmem:[%s2309_s28 + $0x38] sm:$0xff] }
 0x19a   : > { %v922_v63 = vpop.f32.mrf.mxu0  ;;  %1617 = vst [vmem:[%s2749_s22 + $0x138] sm:$0xff] %v920_v43  ;;  %1116 = vmatmul.f32.gmra.mxu3 %v3565_v40  ;;  %v1934_v43 = vld [vmem:[%s2309_s28 + $0x60] sm:$0xff] }
 0x19b   : > { %1222 = vmatmul.f32.gmra.mxu1 %v3566_v34  ;;  %1819 = vmatpush.xpose.msra.mxu3 %v2967_v47 }
 0x19c   : > { %1457 = vmatpush.xpose.msra.mxu0 %v548_v59  ;;  %v1933_v59 = vld [vmem:[%s2309_s28 + $0x190] sm:$0xff] }
 0x19d   : > { %1287 = vmatmul.f32.gmra.mxu2 %v1924_v24  ;;  %1181 = vmatmul.f32.gmra.mxu0 %v3567_v45  ;;  %v857_v56 = vpop.f32.mrf.mxu3  ;;  %v523_v24 = vld [vmem:[#allocation5 + $0x540] sm:$0xff] }
 0x19e   : > { %v858_v14 = vadd.f32 %v857_v56, %v793_v48  ;;  %1808 = vmatpush.xpose.msrb.mxu1 %v523_v24  ;;  %v3574_v56 = vld [vmem:[#allocation43_spill] sm:$0xff] }
 0x19f   : > { %1820 = vmatpush.xpose.msra.mxu3 %v544_v13  ;;  %v1935_v13 = vld [vmem:[%s2309_s28 + $0x80] sm:$0xff] }
 0x1a0   : > { %v2986_v52 = vpop.f32.mrf.mxu2  ;;  %v923_v50 = vadd.f32 %v922_v63, %v858_v14  ;;  %v2989_v38 = vpop.f32.mrf.mxu1  ;;  %1458 = vmatpush.xpose.msra.mxu0 %v543_v5  ;;  %v524_v63 = vld [vmem:[#allocation5 + $0x548] sm:$0xff]  ;;  %v1936_v14 = vld [vmem:[%s2309_s28 + $0x1b8] sm:$0xff] }
 0x1a1   : > { %1527 = vmatpush.xpose.msrb.mxu2 %v524_v63  ;;  %v1937_v5 = vld [vmem:[%s2309_s28 + $0x88] sm:$0xff] }
 0x1a2   : > { %v925_v46 = vpop.f32.mrf.mxu0  ;;  %1620 = vst [vmem:[%s2749_s22 + $0x150] sm:$0xff] %v923_v50  ;;  %1119 = vmatmul.f32.gmra.mxu3 %v3568_v31  ;;  %v519_v50 = vld [vmem:[#allocation5 + $0x520] sm:$0xff] }
 0x1a3   : > { %1225 = vmatmul.f32.gmra.mxu1 %v3569_v37  ;;  %1821 = vmatpush.xpose.msra.mxu3 %v539_v54  ;;  %v518_v37 = vld [vmem:[#allocation5 + $0x518] sm:$0xff]  ;;  %v3575_v54 = vld [vmem:[#allocation45_spill] sm:$0xff] }
 0x1a4   : > { %1459 = vmatpush.xpose.msra.mxu0 %v538_v51  ;;  %1809 = vmatpush.xpose.msrb.mxu1 %v518_v37 }
 0x1a5   : > { %1290 = vmatmul.f32.gmra.mxu2 %v1925_v33  ;;  %1184 = vmatmul.f32.gmra.mxu0 %v3570_v44  ;;  %v860_v6 = vpop.f32.mrf.mxu3  ;;  %v1938_v44 = vld [vmem:[%s2309_s28 + $0xa8] sm:$0xff] }
 0x1a6   : > { %v861_v42 = vadd.f32 %v860_v6, %v796_v26  ;;  %1528 = vmatpush.xpose.msrb.mxu2 %v519_v50  ;;  %v1939_v6 = vld [vmem:[%s2309_s28 + $0x1e0] sm:$0xff] }
 0x1a7   : > { %1822 = vmatpush.xpose.msra.mxu3 %v534_v3  ;;  %v1942_v3 = vld [vmem:[%s2309_s28 + $0x208] sm:$0xff] }
 0x1a8   : > { %v3001_v22 = vpop.f32.mrf.mxu2  ;;  %v926_v53 = vadd.f32 %v925_v46, %v861_v42  ;;  %v3004_v29 = vpop.f32.mrf.mxu1  ;;  %1460 = vmatpush.xpose.msra.mxu0 %v533_v62  ;;  %v1940_v42 = vld [vmem:[%s2309_s28 + $0xb0] sm:$0xff]  ;;  %v1943_v62 = vld [vmem:[%s2309_s28 + $0xd8] sm:$0xff] }
 0x1aa   : > { %v3006_v60 = vpop.f32.mrf.mxu0  ;;  %1623 = vst [vmem:[%s2749_s22 + $0x168] sm:$0xff] %v926_v53  ;;  %1334 = vmatmul.f32.vlgmr.msrb.gmra.mxu3 %v1926_v9 }
 0x1ab   : > { %1228 = vmatmul.f32.gmra.mxu1 %v3571_v17  ;;  %1823 = vmatpush.xpose.msra.mxu3 %v529_v32 }
 0x1ac   : > { %1461 = vmatpush.xpose.msra.mxu0 %v528_v18 }
 0x1ad   : > { %1293 = vmatmul.f32.gmra.mxu2 %v1927_v55  ;;  %1399 = vmatmul.f32.vlgmr.msrb.gmra.mxu0 %v1928_v11  ;;  %v3015_v15 = vpop.f32.mrf.mxu3  ;;  %v1941_v55 = vld [vmem:[%s2309_s28 + $0xd0] sm:$0xff]  ;;  %v3576_v11 = vld [vmem:[#allocation47_spill] sm:$0xff] }
 0x1af   : > { %1824 = vmatpush.xpose.msra.mxu3 %v524_v63 }
 0x1b0   : > { %v3018_v7 = vpop.f32.mrf.mxu2  ;;  %v3020_v27 = vpop.f32.mrf.mxu1  ;;  %1462 = vmatpush.xpose.msra.mxu0 %v523_v24 }
 0x1b2   : > { %v3022_v12 = vpop.f32.mrf.mxu0  ;;  %1337 = vmatmul.f32.gmra.mxu3 %v1929_v41 }
 0x1b3   : > { %1231 = vmatmul.f32.gmra.mxu1 %v3572_v39  ;;  %1825 = vmatpush.xpose.msra.mxu3 %v519_v50  ;;  %v1948_v50 = vld [vmem:[%s2309_s28 + $0x120] sm:$0xff] }
 0x1b4   : > { %1463 = vmatpush.xpose.msra.mxu0 %v518_v37 }
 0x1b5   : > { %1296 = vmatmul.f32.gmra.mxu2 %v1930_v10  ;;  %1402 = vmatmul.f32.gmra.mxu0 %v1931_v1  ;;  %v3028_v30 = vpop.f32.mrf.mxu3  ;;  %v3082_v1 = vld [vmem:[#allocation7] sm:$0x7] }
 0x1b6   : > { %v3085_v32 = vperm.slane %v3082_v1, 1 }
 0x1b8   : > { %v3030_v23 = vpop.f32.mrf.mxu2  ;;  %v3032_v21 = vpop.f32.mrf.mxu1  ;;  %v946_v63 = vadd.f32 %v2864_v49, %v3085_v32  ;;  %v1950_v49 = vld [vmem:[%s2309_s28 + $0x128] sm:$0xff] }
 0x1ba   : > { %v3034_v47 = vpop.f32.mrf.mxu0  ;;  %1340 = vmatmul.f32.gmra.mxu3 %v1932_v20  ;;  %v1945_v20 = vld [vmem:[%s2309_s28 + $0xf8] sm:$0xff] }
 0x1bb   : > { %1234 = vmatmul.f32.gmra.mxu1 %v3573_v2  ;;  %v3577_v2 = vld [vmem:[#allocation50_spill] sm:$0xff] }
 0x1bd   : > { %1299 = vmatmul.f32.gmra.mxu2 %v1933_v59  ;;  %1405 = vmatmul.f32.gmra.mxu0 %v1934_v43  ;;  %v3040_v40 = vpop.f32.mrf.mxu3  ;;  %v1946_v59 = vld [vmem:[%s2309_s28 + $0x230] sm:$0xff]  ;;  %v1947_v43 = vld [vmem:[%s2309_s28 + $0x100] sm:$0xff] }
 0x1c0   : > { %v3042_v34 = vpop.f32.mrf.mxu2  ;;  %v3044_v48 = vpop.f32.mrf.mxu1 }
 0x1c2   : > { %v3046_v45 = vpop.f32.mrf.mxu0  ;;  %1343 = vmatmul.f32.gmra.mxu3 %v1935_v13 }
 0x1c3   : > { %1237 = vmatmul.f32.gmra.mxu1 %v3574_v56 }
 0x1c5   : > { %1302 = vmatmul.f32.gmra.mxu2 %v1936_v14  ;;  %1408 = vmatmul.f32.gmra.mxu0 %v1937_v5  ;;  %v3052_v46 = vpop.f32.mrf.mxu3  ;;  %v1011_v14 = vadd.f32 %v2878_v61, %v946_v63 }
 0x1c7   : > { %v1076_v37 = vadd.f32 %v3015_v15, %v1011_v14 }
 0x1c8   : > { %v3054_v31 = vpop.f32.mrf.mxu2  ;;  %v3056_v33 = vpop.f32.mrf.mxu1 }
 0x1ca   : > { %v3058_v26 = vpop.f32.mrf.mxu0  ;;  %1346 = vmatmul.f32.gmra.mxu3 %v1938_v44  ;;  %v3578_v44 = vld [vmem:[#allocation54_spill] sm:$0xff] }
 0x1cb   : > { %1240 = vmatmul.f32.gmra.mxu1 %v3575_v54  ;;  %v1949_v54 = vld [vmem:[%s2309_s28 + $0x258] sm:$0xff] }
 0x1cd   : > { %1305 = vmatmul.f32.gmra.mxu2 %v1939_v6  ;;  %1411 = vmatmul.f32.gmra.mxu0 %v1940_v42  ;;  %v3064_v51 = vpop.f32.mrf.mxu3  ;;  %v949_v6 = vadd.f32 %v2881_v0, %v3085_v32  ;;  %v1952_v0 = vld [vmem:[%s2309_s28 + $0xb8] sm:$0xff] }
 0x1d0   : > { %v3066_v53 = vpop.f32.mrf.mxu2  ;;  %v3068_v9 = vpop.f32.mrf.mxu1 }
 0x1d2   : > { %v3070_v17 = vpop.f32.mrf.mxu0  ;;  %1349 = vmatmul.f32.gmra.mxu3 %v1941_v55  ;;  %v1141_v55 = vadd.f32 %v3006_v60, %v1076_v37 }
 0x1d3   : > { %1243 = vmatmul.f32.gmra.mxu1 %v3576_v11  ;;  %v1014_v11 = vadd.f32 %v2895_v58, %v949_v6  ;;  %v952_v58 = vadd.f32 %v2898_v4, %v3085_v32  ;;  %v1956_v4 = vld [vmem:[%s2309_s28 + $0xe0] sm:$0xff]  ;;  %v1957_v6 = vld [vmem:[%s2309_s28 + $0x48] sm:$0xff] }
 0x1d5   : > { %1308 = vmatmul.f32.gmra.mxu2 %v1942_v3  ;;  %1414 = vmatmul.f32.gmra.mxu0 %v1943_v62  ;;  %v3076_v41 = vpop.f32.mrf.mxu3 }
 0x1d8   : > { %v3078_v39 = vpop.f32.mrf.mxu2  ;;  %v3080_v10 = vpop.f32.mrf.mxu1 }
 0x1da   : > { %v3087_v18 = vpop.f32.mrf.mxu0  ;;  %1352 = vmatmul.f32.gmra.mxu3 %v1945_v20  ;;  %v1951_v20 = vld [vmem:[%s2309_s28 + $0x148] sm:$0xff] }
 0x1db   : > { %1246 = vmatmul.f32.gmra.mxu1 %v3577_v2  ;;  %v1079_v2 = vadd.f32 %v3028_v30, %v1014_v11 }
 0x1dd   : > { %1311 = vmatmul.f32.gmra.mxu2 %v1946_v59  ;;  %1417 = vmatmul.f32.gmra.mxu0 %v1947_v43  ;;  %v3095_v24 = vpop.f32.mrf.mxu3  ;;  %v1953_v59 = vld [vmem:[%s2309_s28 + $0x20] sm:$0xff]  ;;  %v1954_v43 = vld [vmem:[%s2309_s28 + $0x150] sm:$0xff]  ;;  %v1144_v30 = vadd.f32 %v3022_v12, %v1079_v2 }
 0x1e0   : > { %v3097_v13 = vpop.f32.mrf.mxu2  ;;  %v3099_v56 = vpop.f32.mrf.mxu1 }
 0x1e2   : > { %v3102_v5 = vpop.f32.mrf.mxu0  ;;  %1355 = vmatmul.f32.gmra.mxu3 %v1948_v50  ;;  %v1017_v50 = vadd.f32 %v2912_v35, %v952_v58  ;;  %v955_v35 = vadd.f32 %v2915_v57, %v3085_v32  ;;  %v1960_v57 = vld [vmem:[%s2309_s28 + $0x108] sm:$0xff]  ;;  %v1962_v58 = vld [vmem:[%s2309_s28 + $0x1a0] sm:$0xff] }
 0x1e3   : > { %1249 = vmatmul.f32.gmra.mxu1 %v3578_v44 }
 0x1e5   : > { %1314 = vmatmul.f32.gmra.mxu2 %v1949_v54  ;;  %1420 = vmatmul.f32.gmra.mxu0 %v1950_v49  ;;  %v3111_v61 = vpop.f32.mrf.mxu3  ;;  %v1955_v54 = vld [vmem:[%s2309_s28 + $0x170] sm:$0xff]  ;;  %v1082_v49 = vadd.f32 %v3040_v40, %v1017_v50 }
 0x1e7   : > { %v1147_v40 = vadd.f32 %v3034_v47, %v1082_v49  ;;  %v1963_v49 = vld [vmem:[%s2309_s28 + $0x1c0] sm:$0xff] }
 0x1e8   : > { %v3113_v42 = vpop.f32.mrf.mxu2  ;;  %v1205_v15 = vpop.f32.mrf.mxu1 }
 0x1e9   : > { %v1206_v62 = vadd.f32 %v1205_v15, %v1141_v55  ;;  %v1958_v55 = vld [vmem:[%s2309_s28 + $0x178] sm:$0xff] }
 0x1ea   : > { %v3117_v3 = vpop.f32.mrf.mxu0  ;;  %1358 = vmatmul.f32.gmra.mxu3 %v1951_v20 }
 0x1eb   : > { %1579 = vst [vmem:[%s2749_s22 + $0x8] sm:$0xff] %v1206_v62  ;;  %1476 = vmatmul.f32.vlgmr.msrb.gmra.mxu1 %v1952_v0  ;;  %v1020_v62 = vadd.f32 %v2929_v16, %v955_v35  ;;  %v1959_v0 = vld [vmem:[%s2309_s28 + $0x198] sm:$0xff]  ;;  %v958_v16 = vadd.f32 %v2933_v25, %v3085_v32  ;;  %v1964_v25 = vld [vmem:[%s2309_s28 + $0x130] sm:$0xff] }
 0x1ed   : > { %1529 = vmatmul.f32.vlgmr.msrb.gmra.mxu2 %v1953_v59  ;;  %1423 = vmatmul.f32.gmra.mxu0 %v1954_v43  ;;  %v3127_v60 = vpop.f32.mrf.mxu3  ;;  %v1085_v59 = vadd.f32 %v3052_v46, %v1020_v62  ;;  %v1961_v43 = vld [vmem:[%s2309_s28 + $0x70] sm:$0xff]  ;;  %v1023_v50 = vadd.f32 %v2950_v19, %v958_v16  ;;  %v961_v19 = vadd.f32 %v2955_v36, %v3085_v32  ;;  %v1968_v36 = vld [vmem:[%s2309_s28 + $0x158] sm:$0xff] }
 0x1ef   : > { %v1150_v46 = vadd.f32 %v3046_v45, %v1085_v59 }
 0x1f0   : > { %v3129_v63 = vpop.f32.mrf.mxu2  ;;  %v1208_v14 = vpop.f32.mrf.mxu1 }
 0x1f1   : > { %v1209_v44 = vadd.f32 %v1208_v14, %v1144_v30 }
 0x1f2   : > { %v3133_v37 = vpop.f32.mrf.mxu0  ;;  %1361 = vmatmul.f32.gmra.mxu3 %v1955_v54 }
 0x1f3   : > { %1582 = vst [vmem:[%s2749_s22 + $0x20] sm:$0xff] %v1209_v44  ;;  %1479 = vmatmul.f32.gmra.mxu1 %v1956_v4  ;;  %v1088_v4 = vadd.f32 %v3064_v51, %v1023_v50 }
 0x1f5   : > { %1532 = vmatmul.f32.gmra.mxu2 %v1957_v6  ;;  %1426 = vmatmul.f32.gmra.mxu0 %v1958_v55  ;;  %v3143_v12 = vpop.f32.mrf.mxu3  ;;  %v1965_v6 = vld [vmem:[%s2309_s28 + $0x98] sm:$0xff]  ;;  %v1966_v55 = vld [vmem:[%s2309_s28 + $0x1c8] sm:$0xff]  ;;  %v1153_v51 = vadd.f32 %v3058_v26, %v1088_v4 }
 0x1f6   : > { %v1973_v4 = vld [vmem:[%s2309_s28 + $0xe8] sm:$0xff] }
 0x1f8   : > { %v3145_v15 = vpop.f32.mrf.mxu2  ;;  %v1211_v11 = vpop.f32.mrf.mxu1 }
 0x1f9   : > { %v1212_v2 = vadd.f32 %v1211_v11, %v1147_v40  ;;  %v1026_v11 = vadd.f32 %v2971_v28, %v961_v19  ;;  %v964_v28 = vadd.f32 %v2974_v8, %v3085_v32  ;;  %v1972_v8 = vld [vmem:[%s2309_s28 + $0x180] sm:$0xff] }
 0x1fa   : > { %v3149_v20 = vpop.f32.mrf.mxu0  ;;  %1364 = vmatmul.f32.gmra.mxu3 %v1959_v0  ;;  %v1967_v0 = vld [vmem:[%s2309_s28 + $0x1e8] sm:$0xff] }
 0x1fb   : > { %1585 = vst [vmem:[%s2749_s22 + $0x38] sm:$0xff] %v1212_v2  ;;  %1482 = vmatmul.f32.gmra.mxu1 %v1960_v57  ;;  %v1091_v59 = vadd.f32 %v3076_v41, %v1026_v11  ;;  %v1969_v57 = vld [vmem:[%s2309_s28 + $0xc0] sm:$0xff]  ;;  %v1975_v11 = vld [vmem:[%s2309_s28 + $0x238] sm:$0xff] }
 0x1fd   : > { %1535 = vmatmul.f32.gmra.mxu2 %v1961_v43  ;;  %1429 = vmatmul.f32.gmra.mxu0 %v1962_v58  ;;  %v3159_v47 = vpop.f32.mrf.mxu3  ;;  %v1970_v43 = vld [vmem:[%s2309_s28 + $0x1f0] sm:$0xff]  ;;  %v1156_v41 = vadd.f32 %v3070_v17, %v1091_v59  ;;  %v1978_v59 = vld [vmem:[%s2309_s28 + $0x240] sm:$0xff] }
 0x200   : > { %v3161_v30 = vpop.f32.mrf.mxu2  ;;  %v1214_v14 = vpop.f32.mrf.mxu1 }
 0x201   : > { %v1215_v54 = vadd.f32 %v1214_v14, %v1150_v46  ;;  %v1029_v46 = vadd.f32 %v2986_v52, %v964_v28  ;;  %v967_v52 = vadd.f32 %v2989_v38, %v3085_v32  ;;  %v1976_v38 = vld [vmem:[%s2309_s28 + $0x1a8] sm:$0xff] }
 0x202   : > { %v3165_v44 = vpop.f32.mrf.mxu0  ;;  %1367 = vmatmul.f32.gmra.mxu3 %v1963_v49 }
 0x203   : > { %1588 = vst [vmem:[%s2749_s22 + $0x50] sm:$0xff] %v1215_v54  ;;  %1485 = vmatmul.f32.gmra.mxu1 %v1964_v25  ;;  %v1971_v54 = vld [vmem:[%s2309_s28 + $0x210] sm:$0xff]  ;;  %v1094_v49 = vadd.f32 %v3095_v24, %v1029_v46  ;;  %v1974_v25 = vld [vmem:[%s2309_s28 + $0x218] sm:$0xff]  ;;  %v1032_v19 = vadd.f32 %v3001_v22, %v967_v52  ;;  %v970_v22 = vadd.f32 %v3004_v29, %v3085_v32 }
 0x204   : > { %v1980_v29 = vld [vmem:[%s2309_s28 + $0x1d0] sm:$0xff] }
 0x205   : > { %1538 = vmatmul.f32.gmra.mxu2 %v1965_v6  ;;  %1432 = vmatmul.f32.gmra.mxu0 %v1966_v55  ;;  %v3175_v45 = vpop.f32.mrf.mxu3  ;;  %v1159_v24 = vadd.f32 %v3087_v18, %v1094_v49 }
 0x208   : > { %v3177_v35 = vpop.f32.mrf.mxu2  ;;  %v1217_v40 = vpop.f32.mrf.mxu1 }
 0x209   : > { %v1218_v2 = vadd.f32 %v1217_v40, %v1153_v51 }
 0x20a   : > { %v3181_v62 = vpop.f32.mrf.mxu0  ;;  %1370 = vmatmul.f32.gmra.mxu3 %v1967_v0  ;;  %v1977_v0 = vld [vmem:[%s2309_s28 + $0x110] sm:$0xff] }
 0x20b   : > { %1591 = vst [vmem:[%s2749_s22 + $0x68] sm:$0xff] %v1218_v2  ;;  %1488 = vmatmul.f32.gmra.mxu1 %v1968_v36  ;;  %v1097_v2 = vadd.f32 %v3111_v61, %v1032_v19 }
 0x20d   : > { %1541 = vmatmul.f32.gmra.mxu2 %v1969_v57  ;;  %1435 = vmatmul.f32.gmra.mxu0 %v1970_v43  ;;  %v3191_v26 = vpop.f32.mrf.mxu3  ;;  %v1162_v61 = vadd.f32 %v3102_v5, %v1097_v2  ;;  %v1035_v43 = vadd.f32 %v3018_v7, %v970_v22  ;;  %v973_v7 = vadd.f32 %v3020_v27, %v3085_v32  ;;  %v1984_v27 = vld [vmem:[%s2309_s28 + $0x1f8] sm:$0xff] }
 0x20f   : > { %v1100_v46 = vadd.f32 %v3127_v60, %v1035_v43 }
 0x210   : > { %v3193_v58 = vpop.f32.mrf.mxu2  ;;  %v1220_v16 = vpop.f32.mrf.mxu1 }
 0x211   : > { %v1221_v50 = vadd.f32 %v1220_v16, %v1156_v41  ;;  %v1979_v16 = vld [vmem:[%s2309_s28 + $0x260] sm:$0xff]  ;;  %v1165_v60 = vadd.f32 %v3117_v3, %v1100_v46 }
 0x212   : > { %v3197_v14 = vpop.f32.mrf.mxu0  ;;  %1373 = vmatmul.f32.gmra.mxu3 %v1971_v54  ;;  %v1982_v54 = vld [vmem:[%s2309_s28 + $0x268] sm:$0xff] }
 0x213   : > { %1594 = vst [vmem:[%s2749_s22 + $0x80] sm:$0xff] %v1221_v50  ;;  %1491 = vmatmul.f32.gmra.mxu1 %v1972_v8  ;;  %v1981_v50 = vld [vmem:[%s2309_s28 + $0x138] sm:$0xff]  ;;  %v3245_v8 = vperm.slane %v3082_v1, 2 }
 0x214   : > { %v1986_v1 = vld [vmem:[%s2309_s28 + $0x18] sm:$0xff] }
 0x215   : > { %1544 = vmatmul.f32.gmra.mxu2 %v1973_v4  ;;  %1438 = vmatmul.f32.gmra.mxu0 %v1974_v25  ;;  %v3207_v17 = vpop.f32.mrf.mxu3  ;;  %v1038_v25 = vadd.f32 %v3030_v23, %v973_v7  ;;  %v1271_v3 = vadd.f32 %v3129_v63, %v3245_v8  ;;  %v976_v23 = vadd.f32 %v3032_v21, %v3085_v32  ;;  %v1988_v21 = vld [vmem:[%s2309_s28 + $0x220] sm:$0xff] }
 0x217   : > { %v1103_v19 = vadd.f32 %v3143_v12, %v1038_v25  ;;  %v1041_v63 = vadd.f32 %v3042_v34, %v976_v23  ;;  %v979_v34 = vadd.f32 %v3044_v48, %v3085_v32  ;;  %v1991_v25 = vld [vmem:[%s2309_s28 + $0x250] sm:$0xff]  ;;  %v1992_v48 = vld [vmem:[%s2309_s28 + $0x248] sm:$0xff] }
 0x218   : > { %v3209_v6 = vpop.f32.mrf.mxu2  ;;  %v1223_v55 = vpop.f32.mrf.mxu1 }
 0x219   : > { %v1224_v40 = vadd.f32 %v1223_v55, %v1159_v24  ;;  %v1983_v55 = vld [vmem:[%s2309_s28 + $0x200] sm:$0xff]  ;;  %v1106_v43 = vadd.f32 %v3159_v47, %v1041_v63  ;;  %v1998_v63 = vld [vmem:[%s2309_s28 + $0x90] sm:$0xff] }
 0x21a   : > { %v3213_v51 = vpop.f32.mrf.mxu0  ;;  %1376 = vmatmul.f32.gmra.mxu3 %v1975_v11 }
 0x21b   : > { %1597 = vst [vmem:[%s2749_s22 + $0x98] sm:$0xff] %v1224_v40  ;;  %1494 = vmatmul.f32.gmra.mxu1 %v1976_v38  ;;  %v1985_v40 = vld [vmem:[%s2309_s28 + $0x160] sm:$0xff]  ;;  %v1168_v38 = vadd.f32 %v3133_v37, %v1103_v19  ;;  %v1274_v37 = vadd.f32 %v3145_v15, %v3245_v8  ;;  %v1044_v15 = vadd.f32 %v3054_v31, %v979_v34 }
 0x21c   : > { %v982_v31 = vadd.f32 %v3056_v33, %v3085_v32  ;;  %v1996_v33 = vld [vmem:[%s2309_s28 + $0x270] sm:$0xff]  ;;  %v988_v34 = vadd.f32 %v3080_v10, %v3085_v32  ;;  %v1286_v10 = vadd.f32 %v3209_v6, %v3245_v8 }
 0x21d   : > { %1547 = vmatmul.f32.gmra.mxu2 %v1977_v0  ;;  %1441 = vmatmul.f32.gmra.mxu0 %v1978_v59  ;;  %v3223_v18 = vpop.f32.mrf.mxu3 }
 0x220   : > { %v3225_v36 = vpop.f32.mrf.mxu2  ;;  %v1226_v57 = vpop.f32.mrf.mxu1 }
 0x221   : > { %v1227_v41 = vadd.f32 %v1226_v57, %v1162_v61  ;;  %v1987_v57 = vld [vmem:[%s2309_s28 + $0x228] sm:$0xff]  ;;  %v1289_v6 = vadd.f32 %v3225_v36, %v3245_v8 }
 0x222   : > { %v3229_v28 = vpop.f32.mrf.mxu0  ;;  %1379 = vmatmul.f32.gmra.mxu3 %v1979_v16  ;;  %v1990_v16 = vld [vmem:[%s2309_s28 + $0x40] sm:$0xff] }
 0x223   : > { %1600 = vst [vmem:[%s2749_s22 + $0xb0] sm:$0xff] %v1227_v41  ;;  %1497 = vmatmul.f32.gmra.mxu1 %v1980_v29  ;;  %v1989_v41 = vld [vmem:[%s2309_s28 + $0x188] sm:$0xff] }
 0x225   : > { %1550 = vmatmul.f32.gmra.mxu2 %v1981_v50  ;;  %1444 = vmatmul.f32.gmra.mxu0 %v1982_v54  ;;  %v3239_v5 = vpop.f32.mrf.mxu3  ;;  %v1171_v50 = vadd.f32 %v3149_v20, %v1106_v43  ;;  %v1277_v20 = vadd.f32 %v3161_v30, %v3245_v8  ;;  %v1047_v30 = vadd.f32 %v3066_v53, %v982_v31 }
 0x226   : > { %v985_v53 = vadd.f32 %v3068_v9, %v3085_v32  ;;  %v1283_v9 = vadd.f32 %v3193_v58, %v3245_v8  ;;  %v991_v58 = vadd.f32 %v3099_v56, %v3085_v32 }
 0x228   : > { %v3241_v49 = vpop.f32.mrf.mxu2  ;;  %v1229_v4 = vpop.f32.mrf.mxu1 }
 0x229   : > { %v1230_v52 = vadd.f32 %v1229_v4, %v1165_v60 }
 0x22a   : > { %v1400_v24 = vpop.f32.mrf.mxu0  ;;  %1565 = vmatmul.f32.vlgmr.msra.gmra.mxu3 %v1983_v55  ;;  %v1994_v55 = vld [vmem:[%s2309_s28 + $0x68] sm:$0xff] }
 0x22b   : > { %1603 = vst [vmem:[%s2749_s22 + $0xc8] sm:$0xff] %v1230_v52  ;;  %1500 = vmatmul.f32.gmra.mxu1 %v1984_v27  ;;  %v1109_v52 = vadd.f32 %v3175_v45, %v1044_v15  ;;  %v1053_v15 = vadd.f32 %v3097_v13, %v988_v34 }
 0x22d   : > { %1553 = vmatmul.f32.gmra.mxu2 %v1985_v40  ;;  %1464 = vmatmul.f32.vlgmr.msra.gmra.mxu0 %v1986_v1  ;;  %v1335_v11 = vpop.f32.mrf.mxu3  ;;  %v1174_v40 = vadd.f32 %v3165_v44, %v1109_v52  ;;  %v1280_v44 = vadd.f32 %v3177_v35, %v3245_v8 }
 0x22e   : > { %v1336_v12 = vadd.f32 %v1335_v11, %v1271_v3 }
 0x230   : > { %v3258_v2 = vpop.f32.mrf.mxu2  ;;  %v1232_v0 = vpop.f32.mrf.mxu1  ;;  %v3261_v59 = vadd.f32 %v1400_v24, %v1336_v12  ;;  %v1993_v24 = vld [vmem:[%s2309_s28 + $0x1b0] sm:$0xff]  ;;  %v1995_v12 = vld [vmem:[%s2309_s28 + $0x278] sm:$0xff] }
 0x231   : > { %v1233_v22 = vadd.f32 %v1232_v0, %v1168_v38  ;;  %v1112_v38 = vadd.f32 %v3191_v26, %v1047_v30  ;;  %v1997_v0 = vld [vmem:[%s2309_s28 + $0x1d8] sm:$0xff] }
 0x232   : > { %v1403_v61 = vpop.f32.mrf.mxu0  ;;  %1568 = vmatmul.f32.gmra.mxu3 %v1987_v57 }
 0x233   : > { %1606 = vst [vmem:[%s2749_s22 + $0xe0] sm:$0xff] %v1233_v22  ;;  %1503 = vmatmul.f32.gmra.mxu1 %v1988_v21  ;;  %v1177_v26 = vadd.f32 %v3181_v62, %v1112_v38 }
 0x235   : > { %1556 = vmatmul.f32.gmra.mxu2 %v1989_v41  ;;  %1467 = vmatmul.f32.gmra.mxu0 %v1990_v16  ;;  %v1338_v46 = vpop.f32.mrf.mxu3  ;;  %v1050_v41 = vadd.f32 %v3078_v39, %v985_v53 }
 0x236   : > { %v1339_v47 = vadd.f32 %v1338_v46, %v1274_v37 }
 0x237   : > { %v1115_v35 = vadd.f32 %v3207_v17, %v1050_v41 }
 0x238   : > { %v3274_v29 = vpop.f32.mrf.mxu2  ;;  %v1235_v54 = vpop.f32.mrf.mxu1  ;;  %v3277_v7 = vadd.f32 %v1403_v61, %v1339_v47 }
 0x239   : > { %v1236_v60 = vadd.f32 %v1235_v54, %v1171_v50  ;;  %v1180_v50 = vadd.f32 %v3197_v14, %v1115_v35 }
 0x23a   : > { %v1406_v4 = vpop.f32.mrf.mxu0  ;;  %1571 = vmatmul.f32.gmra.mxu3 %v1991_v25 }
 0x23b   : > { %1609 = vst [vmem:[%s2749_s22 + $0xf8] sm:$0xff] %v1236_v60  ;;  %1506 = vmatmul.f32.gmra.mxu1 %v1992_v48 }
 0x23d   : > { %1559 = vmatmul.f32.gmra.mxu2 %v1993_v24  ;;  %1470 = vmatmul.f32.gmra.mxu0 %v1994_v55  ;;  %v1341_v19 = vpop.f32.mrf.mxu3 }
 0x23e   : > { %v1342_v45 = vadd.f32 %v1341_v19, %v1277_v20  ;;  %v1056_v20 = vadd.f32 %v3113_v42, %v991_v58  ;;  %v1292_v42 = vadd.f32 %v3241_v49, %v3245_v8 }
 0x240   : > { %v3290_v27 = vpop.f32.mrf.mxu2  ;;  %v1238_v3 = vpop.f32.mrf.mxu1  ;;  %v3293_v1 = vadd.f32 %v1406_v4, %v1342_v45  ;;  %v1118_v4 = vadd.f32 %v3223_v18, %v1053_v15  ;;  %v1121_v31 = vadd.f32 %v3239_v5, %v1056_v20 }
 0x241   : > { %v1239_v23 = vadd.f32 %v1238_v3, %v1174_v40 }
 0x242   : > { %v1409_v11 = vpop.f32.mrf.mxu0  ;;  %1574 = vmatmul.f32.gmra.mxu3 %v1995_v12  ;;  %v1183_v48 = vadd.f32 %v3213_v51, %v1118_v4  ;;  %v1186_v45 = vadd.f32 %v3229_v28, %v1121_v31 }
 0x243   : > { %1612 = vst [vmem:[%s2749_s22 + $0x110] sm:$0xff] %v1239_v23  ;;  %1509 = vmatmul.f32.gmra.mxu1 %v1996_v33  ;;  %v1295_v33 = vadd.f32 %v3258_v2, %v3245_v8  ;;  %v1301_v2 = vadd.f32 %v3290_v27, %v3245_v8 }
 0x245   : > { %1562 = vmatmul.f32.gmra.mxu2 %v1997_v0  ;;  %1473 = vmatmul.f32.gmra.mxu0 %v1998_v63  ;;  %v1344_v22 = vpop.f32.mrf.mxu3 }
 0x246   : > { %v1345_v57 = vadd.f32 %v1344_v22, %v1280_v44 }
 0x248   : > { %v3306_v61 = vpop.f32.mrf.mxu2  ;;  %v1241_v43 = vpop.f32.mrf.mxu1  ;;  %v3309_v21 = vadd.f32 %v1409_v11, %v1345_v57  ;;  %v1298_v57 = vadd.f32 %v3274_v29, %v3245_v8 }
 0x249   : > { %v1242_v37 = vadd.f32 %v1241_v43, %v1177_v26 }
 0x24a   : > { %v1412_v16 = vpop.f32.mrf.mxu0 }
 0x24b   : > { %1615 = vst [vmem:[%s2749_s22 + $0x128] sm:$0xff] %v1242_v37 }
 0x24d   : > { %v1347_v46 = vpop.f32.mrf.mxu3 }
 0x24e   : > { %v1348_v62 = vadd.f32 %v1347_v46, %v1283_v9 }
 0x250   : > { %v3318_v47 = vpop.f32.mrf.mxu2  ;;  %v1244_v54 = vpop.f32.mrf.mxu1  ;;  %v3321_v39 = vadd.f32 %v1412_v16, %v1348_v62 }
 0x251   : > { %v1245_v60 = vadd.f32 %v1244_v54, %v1180_v50  ;;  %v1304_v50 = vadd.f32 %v3306_v61, %v3245_v8 }
 0x252   : > { %v1415_v17 = vpop.f32.mrf.mxu0 }
 0x253   : > { %1618 = vst [vmem:[%s2749_s22 + $0x140] sm:$0xff] %v1245_v60 }
 0x255   : > { %v1350_v25 = vpop.f32.mrf.mxu3 }
 0x256   : > { %v1351_v14 = vadd.f32 %v1350_v25, %v1286_v10 }
 0x258   : > { %v3330_v52 = vpop.f32.mrf.mxu2  ;;  %v1247_v24 = vpop.f32.mrf.mxu1  ;;  %v1416_v13 = vadd.f32 %v1415_v17, %v1351_v14 }
 0x259   : > { %v1248_v55 = vadd.f32 %v1247_v24, %v1183_v48 }
 0x25a   : > { %v1418_v18 = vpop.f32.mrf.mxu0 }
 0x25b   : > { %1621 = vst [vmem:[%s2749_s22 + $0x158] sm:$0xff] %v1248_v55 }
 0x25d   : > { %v1353_v32 = vpop.f32.mrf.mxu3 }
 0x25e   : > { %v1354_v19 = vadd.f32 %v1353_v32, %v1289_v6 }
 0x260   : > { %v3338_v56 = vpop.f32.mrf.mxu2  ;;  %v1250_v51 = vpop.f32.mrf.mxu1  ;;  %v1419_v40 = vadd.f32 %v1418_v18, %v1354_v19 }
 0x261   : > { %v1251_v3 = vadd.f32 %v1250_v51, %v1186_v45 }
 0x262   : > { %v1421_v30 = vpop.f32.mrf.mxu0 }
 0x263   : > { %1624 = vst [vmem:[%s2749_s22 + $0x170] sm:$0xff] %v1251_v3 }
 0x265   : > { %v1356_v23 = vpop.f32.mrf.mxu3 }
 0x266   : > { %v1357_v11 = vadd.f32 %v1356_v23, %v1292_v42 }
 0x268   : > { %v3344_v5 = vpop.f32.mrf.mxu2  ;;  %v1477_v12 = vpop.f32.mrf.mxu1  ;;  %v1422_v36 = vadd.f32 %v1421_v30, %v1357_v11  ;;  %v1307_v30 = vadd.f32 %v3318_v47, %v3245_v8 }
 0x269   : > { %v1478_v10 = vadd.f32 %v1477_v12, %v3321_v39 }
 0x26a   : > { %v1424_v38 = vpop.f32.mrf.mxu0 }
 0x26d   : > { %v1359_v0 = vpop.f32.mrf.mxu3 }
 0x26e   : > { %v1360_v28 = vadd.f32 %v1359_v0, %v1295_v33 }
 0x270   : > { %v1530_v44 = vpop.f32.mrf.mxu2  ;;  %v1480_v63 = vpop.f32.mrf.mxu1  ;;  %v1425_v53 = vadd.f32 %v1424_v38, %v1360_v28  ;;  %v1310_v28 = vadd.f32 %v3330_v52, %v3245_v8  ;;  %v1313_v52 = vadd.f32 %v3338_v56, %v3245_v8 }
 0x271   : > { %v1481_v20 = vadd.f32 %v1480_v63, %v1416_v13 }
 0x272   : > { %v1427_v22 = vpop.f32.mrf.mxu0 }
 0x275   : > { %v1362_v49 = vpop.f32.mrf.mxu3 }
 0x276   : > { %v1363_v26 = vadd.f32 %v1362_v49, %v1298_v57 }
 0x278   : > { %v3350_v43 = vpop.f32.mrf.mxu2  ;;  %v1483_v41 = vpop.f32.mrf.mxu1  ;;  %v3352_v37 = vadd.f32 %v1427_v22, %v1363_v26 }
 0x279   : > { %v1484_v32 = vadd.f32 %v1483_v41, %v1419_v40 }
 0x27a   : > { %v1430_v16 = vpop.f32.mrf.mxu0 }
 0x27d   : > { %v1365_v35 = vpop.f32.mrf.mxu3 }
 0x27e   : > { %v1366_v9 = vadd.f32 %v1365_v35, %v1301_v2 }
 0x280   : > { %v3356_v34 = vpop.f32.mrf.mxu2  ;;  %v1486_v46 = vpop.f32.mrf.mxu1  ;;  %v3358_v62 = vadd.f32 %v1430_v16, %v1366_v9 }
 0x281   : > { %v1487_v42 = vadd.f32 %v1486_v46, %v1422_v36 }
 0x282   : > { %v1433_v29 = vpop.f32.mrf.mxu0 }
 0x285   : > { %v1368_v54 = vpop.f32.mrf.mxu3 }
 0x286   : > { %v1369_v15 = vadd.f32 %v1368_v54, %v1304_v50 }
 0x288   : > { %v3362_v60 = vpop.f32.mrf.mxu2  ;;  %v1489_v17 = vpop.f32.mrf.mxu1  ;;  %v3364_v4 = vadd.f32 %v1433_v29, %v1369_v15 }
 0x289   : > { %v1490_v47 = vadd.f32 %v1489_v17, %v1425_v53 }
 0x28a   : > { %v1436_v27 = vpop.f32.mrf.mxu0 }
 0x28d   : > { %v1371_v58 = vpop.f32.mrf.mxu3 }
 0x28e   : > { %v1372_v23 = vadd.f32 %v1371_v58, %v1307_v30 }
 0x290   : > { %v1542_v25 = vpop.f32.mrf.mxu2  ;;  %v1492_v48 = vpop.f32.mrf.mxu1  ;;  %v1437_v0 = vadd.f32 %v1436_v27, %v1372_v23 }
 0x291   : > { %v1543_v14 = vadd.f32 %v1542_v25, %v1478_v10  ;;  %v1493_v9 = vadd.f32 %v1492_v48, %v3352_v37  ;;  %v1316_v37 = vadd.f32 %v3344_v5, %v3245_v8 }
 0x292   : > { %v1439_v24 = vpop.f32.mrf.mxu0 }
 0x293   : > { %1592 = vst [vmem:[%s2749_s22 + $0x70] sm:$0xff] %v1543_v14 }
 0x295   : > { %v1374_v61 = vpop.f32.mrf.mxu3 }
 0x296   : > { %v1375_v57 = vadd.f32 %v1374_v61, %v1310_v28 }
 0x298   : > { %v1545_v55 = vpop.f32.mrf.mxu2  ;;  %v1495_v31 = vpop.f32.mrf.mxu1  ;;  %v1440_v35 = vadd.f32 %v1439_v24, %v1375_v57 }
 0x299   : > { %v1546_v18 = vadd.f32 %v1545_v55, %v1481_v20  ;;  %v1496_v58 = vadd.f32 %v1495_v31, %v3358_v62 }
 0x29a   : > { %v1442_v6 = vpop.f32.mrf.mxu0 }
 0x29b   : > { %1595 = vst [vmem:[%s2749_s22 + $0x88] sm:$0xff] %v1546_v18 }
 0x29d   : > { %v1377_v19 = vpop.f32.mrf.mxu3 }
 0x29e   : > { %v1378_v29 = vadd.f32 %v1377_v19, %v1313_v52 }
 0x2a0   : > { %v1548_v45 = vpop.f32.mrf.mxu2  ;;  %v3369_v39 = vpop.f32.mrf.mxu1 }
 0x2a1   : > { %v1549_v51 = vadd.f32 %v1548_v45, %v1484_v32  ;;  %v1499_v55 = vadd.f32 %v3369_v39, %v3364_v4 }
 0x2a2   : > { %v1445_v3 = vpop.f32.mrf.mxu0 }
 0x2a3   : > { %1598 = vst [vmem:[%s2749_s22 + $0xa0] sm:$0xff] %v1549_v51 }
 0x2a5   : > { %v1380_v13 = vpop.f32.mrf.mxu3 }
 0x2a6   : > { %v1381_v14 = vadd.f32 %v1380_v13, %v1316_v37 }
 0x2a8   : > { %v1551_v11 = vpop.f32.mrf.mxu2  ;;  %v1501_v38 = vpop.f32.mrf.mxu1 }
 0x2a9   : > { %v1552_v12 = vadd.f32 %v1551_v11, %v1487_v42  ;;  %v1502_v22 = vadd.f32 %v1501_v38, %v1437_v0 }
 0x2aa   : > { %v1465_v40 = vpop.f32.mrf.mxu0 }
 0x2ab   : > { %1601 = vst [vmem:[%s2749_s22 + $0xb8] sm:$0xff] %v1552_v12  ;;  %v1466_v33 = vadd.f32 %v1465_v40, %v3261_v59 }
 0x2ad   : > { %v1531_v63 = vadd.f32 %v1530_v44, %v1466_v33  ;;  %v1566_v36 = vpop.f32.mrf.mxu3 }
 0x2ae   : > { %v1567_v26 = vadd.f32 %v1566_v36, %v1502_v22 }
 0x2af   : > { %1580 = vst [vmem:[%s2749_s22 + $0x10] sm:$0xff] %v1531_v63 }
 0x2b0   : > { %v1554_v49 = vpop.f32.mrf.mxu2  ;;  %1616 = vst [vmem:[%s2749_s22 + $0x130] sm:$0xff] %v1567_v26  ;;  %v1504_v16 = vpop.f32.mrf.mxu1 }
 0x2b1   : > { %v1555_v41 = vadd.f32 %v1554_v49, %v1490_v47  ;;  %v1505_v53 = vadd.f32 %v1504_v16, %v1440_v35 }
 0x2b2   : > { %v1468_v59 = vpop.f32.mrf.mxu0 }
 0x2b3   : > { %1604 = vst [vmem:[%s2749_s22 + $0xd0] sm:$0xff] %v1555_v41  ;;  %v1469_v2 = vadd.f32 %v1468_v59, %v3277_v7 }
 0x2b5   : > { %v1534_v44 = vadd.f32 %v3350_v43, %v1469_v2  ;;  %v1569_v46 = vpop.f32.mrf.mxu3  ;;  %v1443_v43 = vadd.f32 %v1442_v6, %v1378_v29 }
 0x2b6   : > { %v1570_v54 = vadd.f32 %v1569_v46, %v1505_v53 }
 0x2b7   : > { %1583 = vst [vmem:[%s2749_s22 + $0x28] sm:$0xff] %v1534_v44 }
 0x2b8   : > { %v1557_v50 = vpop.f32.mrf.mxu2  ;;  %1619 = vst [vmem:[%s2749_s22 + $0x148] sm:$0xff] %v1570_v54  ;;  %v1507_v17 = vpop.f32.mrf.mxu1 }
 0x2b9   : > { %v1558_v15 = vadd.f32 %v1557_v50, %v1493_v9  ;;  %v1508_v10 = vadd.f32 %v1507_v17, %v1443_v43 }
 0x2ba   : > { %v1471_v7 = vpop.f32.mrf.mxu0 }
 0x2bb   : > { %1607 = vst [vmem:[%s2749_s22 + $0xe8] sm:$0xff] %v1558_v15  ;;  %v1472_v56 = vadd.f32 %v1471_v7, %v3293_v1 }
 0x2bd   : > { %v1537_v27 = vadd.f32 %v3356_v34, %v1472_v56  ;;  %v1572_v25 = vpop.f32.mrf.mxu3  ;;  %v1446_v34 = vadd.f32 %v1445_v3, %v1381_v14 }
 0x2be   : > { %v1573_v24 = vadd.f32 %v1572_v25, %v1508_v10 }
 0x2bf   : > { %1586 = vst [vmem:[%s2749_s22 + $0x40] sm:$0xff] %v1537_v27 }
 0x2c0   : > { %v1560_v48 = vpop.f32.mrf.mxu2  ;;  %1622 = vst [vmem:[%s2749_s22 + $0x160] sm:$0xff] %v1573_v24  ;;  %v1510_v1 = vpop.f32.mrf.mxu1 }
 0x2c1   : > { %v1561_v20 = vadd.f32 %v1560_v48, %v1496_v58  ;;  %v1511_v61 = vadd.f32 %v1510_v1, %v1446_v34 }
 0x2c2   : > { %v1474_v8 = vpop.f32.mrf.mxu0 }
 0x2c3   : > { %1610 = vst [vmem:[%s2749_s22 + $0x100] sm:$0xff] %v1561_v20  ;;  %v1475_v5 = vadd.f32 %v1474_v8, %v3309_v21 }
 0x2c5   : > { %v1540_v62 = vadd.f32 %v3362_v60, %v1475_v5  ;;  %v1575_v18 = vpop.f32.mrf.mxu3 }
 0x2c6   : > { %v1576_v6 = vadd.f32 %v1575_v18, %v1511_v61 }
 0x2c7   : > { %1589 = vst [vmem:[%s2749_s22 + $0x58] sm:$0xff] %v1540_v62 }
 0x2c8   : > { %v1563_v31 = vpop.f32.mrf.mxu2  ;;  %1625 = vst [vmem:[%s2749_s22 + $0x178] sm:$0xff] %v1576_v6 }
 0x2c9   : > { %v1564_v32 = vadd.f32 %v1563_v31, %v1499_v55 }
 0x2cb   : > { %1613 = vst [vmem:[%s2749_s22 + $0x118] sm:$0xff] %v1564_v32 }
 0x2cc   : > { %2116 = shalt.err (!%p2113_p0)
}
 0x2cd   : > { %s2181_s11 = smov 384   ;;  %s2182_s28 = smov 24  }
 0x2ce   : > { %1841 = dma.vmem_to_hbm [thread:$0]  (%p2285_p7), %s1643_s15, 6144, %s1645_s29, %s1627_s30, %s2181_s11, %s2181_s11, %s2182_s28  }
 0x2cf PF: > { %s1659_s20 = sand.u32 1, %s2155_s12   ;;  %p1855_p3 = pnand %p1766_p11, %p2252_p6 }
 0x2d0   : > { %s1660_s22 = scalar_lea.sflag [#allocation4], %s1659_s20 }
 0x2d1   : > { %p1856_p5 = pneg %p1855_p3 }
 0x2d3   : > { %2150 = dma.done.wait (%p1856_p5), %s1660_s22, 6144  }
 0x2d4   : > { %2152 = vsyncadd (%p1856_p5), %s1660_s22, 4294961152  ;;  %s20_s17 = sadd.s32 1, %s2175_s17   ;;  %s3579_s12 = smov %s2159_s13 }
 0x2d5   : > { %p17_p9 = scmp.ge.s32.totalorder %s20_s17, 4   ;;  %s3580_s13 = smov %s2163_s14 }
 0x2d6   : > { %s3581_s14 = smov %s2293_s26  ;;  %s3582_s15 = smov %s2171_s16 }
 0x2d7   : > { %s3583_s16 = smov %s3585_s10  ;;  %19 = sbr.rel (!%p17_p9) target bundleno = 7 (0x7), region = 87 }
 0x2dc   :  { %1666 = vsyncpa [#allocation3], 1 }
 0x2dd   :  { %1668 = vsyncpa [#allocation3 + $0x1], 1 }
 0x2de   :  { %1669 = vsyncpa [#allocation6], 1 }
 0x2df   :  { %1670 = vsyncpa [#allocation4], 1 }
 0x2e0   :  { %1672 = vsyncpa [#allocation4 + $0x1], 1 }

</bundles_post_ra>
